<compile_context>
chip_gen: v7x
topology: tpu7x:2x2x1
jax: 0.10.0
libtpu: 0.0.40
codegen_flags: <defaults>
</compile_context>

<pallas_src>
import jax
import jax.numpy as jnp
from jax import lax
from jax.experimental import pallas as pl
from jax.experimental.pallas import tpu as pltpu


def _make_fm_kernel(embed_dim, seg_offsets, seg_sizes, tb):
    D = embed_dim

    def kernel(idx_ref, lhs_ref, b_ref, out_ref, onehot_ref):
        dt = onehot_ref.dtype
        # Build the (SumVp, tb) multi-hot selection matrix, one vocab segment per field.
        # Local iota per segment -> no global offsets needed on the indices; the segment
        # offset is a static, 128-aligned sublane slice of the VMEM scratch.
        for f, (off, vp) in enumerate(zip(seg_offsets, seg_sizes)):
            row_id = lax.broadcasted_iota(jnp.int32, (vp, tb), 0)          # (vp, tb)
            onehot_ref[off:off + vp, :] = (row_id == idx_ref[f:f + 1, :]).astype(dt)

        # One MXU matmul: rows [0, D) -> s1 = sum_f emb_f, row D -> first-order term
        # sum_f w_f.emb_f, row D+1 -> sum_f ||emb_f||^2.  f32 accumulation.
        res = jnp.dot(lhs_ref[...], onehot_ref[...],
                      preferred_element_type=jnp.float32)                  # (Dp, tb)

        s1 = res[:D, :]                                                    # (D, tb)
        y_lin = res[D:D + 1, :] + b_ref[0]                                 # (1, tb)
        sum_sq = res[D + 1:D + 2, :]                                       # (1, tb)
        y_fm = 0.5 * (jnp.sum(s1 * s1, axis=0, keepdims=True) - sum_sq)    # (1, tb)
        out_ref[...] = jax.nn.sigmoid(y_lin + y_fm).astype(out_ref.dtype)

    return kernel


def prepare_fm_params(tables, w, bias, *, param_dtype=jnp.bfloat16):
    """One-time (hoisted) parameter packing.

    tables: list of (vocab_f, D) f32 embedding tables; w: (F*D,) LR weight; bias: (1,).
    Returns a dict with the fused (Dp, SumVp) matrix (tables^T + LR row + sq-norm row),
    per-field segment offsets/sizes, and the bias.
    """
    F = len(tables)
    D = int(tables[0].shape[1])
    assert all(int(t.shape[1]) == D for t in tables), "all fields must share embed_dim"
    w2 = jnp.asarray(w, jnp.float32).reshape(F, D)

    seg_offsets, seg_sizes, cols, lr_rows, sq_rows = [], [], [], [], []
    off = 0
    for f, t in enumerate(tables):
        t = jnp.asarray(t, jnp.float32)
        V = int(t.shape[0])
        Vp = ((V + 127) // 128) * 128                       # lane-pad each vocab segment
        seg_offsets.append(off)
        seg_sizes.append(Vp)
        off += Vp
        cols.append(jnp.zeros((D, Vp), jnp.float32).at[:, :V].set(t.T))
        lr_rows.append(jnp.zeros((Vp,), jnp.float32).at[:V].set(t @ w2[f]))
        sq_rows.append(jnp.zeros((Vp,), jnp.float32).at[:V].set(jnp.sum(t * t, axis=1)))
    sum_vp = off

    acc_rows = ((D + 2 + 7) // 8) * 8                       # pad sublane dim to multiple of 8
    big = jnp.zeros((acc_rows, sum_vp), jnp.float32)
    big = big.at[:D, :].set(jnp.concatenate(cols, axis=1))
    big = big.at[D, :].set(jnp.concatenate(lr_rows, axis=0))
    big = big.at[D + 1, :].set(jnp.concatenate(sq_rows, axis=0))
    big = big.astype(param_dtype)

    return dict(
        lhs=big,
        bias=jnp.asarray(bias, jnp.float32).reshape(1),
        embed_dim=D,
        num_fields=F,
        seg_offsets=tuple(seg_offsets),
        seg_sizes=tuple(seg_sizes),
    )


def _pick_batch_tile(B, tb_max=1024):
    """Largest 128-multiple tile (amortize per-step overhead) while keeping >= 2 grid
    steps whenever the batch allows (v7x megacore sharding)."""
    bp128 = ((B + 127) // 128) * 128
    if bp128 < 256:
        return 128
    return min(tb_max, max(128, (bp128 // 2 // 128) * 128))


def fm_forward(sparse_idx_list, params, *, tb=None):
    """sparse_idx_list: list of (B,) int32 per-field indices.  Returns (B,) f32 sigmoid(FM)."""
    F = params["num_fields"]
    D = params["embed_dim"]
    lhs = params["lhs"]
    sum_vp = lhs.shape[1]
    B = sparse_idx_list[0].shape[0]

    idx = jnp.stack(sparse_idx_list, axis=0).astype(jnp.int32)             # (F, B)
    if tb is None:
        tb = _pick_batch_tile(B)
    Bp = ((B + tb - 1) // tb) * tb
    if Bp != B:
        idx = jnp.pad(idx, ((0, 0), (0, Bp - B)))                          # pad lanes w/ idx 0

    kernel = _make_fm_kernel(D, params["seg_offsets"], params["seg_sizes"], tb)

    out = pl.pallas_call(
        kernel,
        out_shape=jax.ShapeDtypeStruct((1, Bp), jnp.float32),
        grid_spec=pltpu.PrefetchScalarGridSpec(
            num_scalar_prefetch=0,
            grid=(Bp // tb,),
            in_specs=[
                pl.BlockSpec((F, tb), lambda i: (0, i)),                   # indices (streamed)
                pl.BlockSpec(lhs.shape, lambda i: (0, 0)),                 # fused table (resident)
                pl.BlockSpec(memory_space=pltpu.MemorySpace.SMEM),         # bias scalar
            ],
            out_specs=pl.BlockSpec((1, tb), lambda i: (0, i)),             # lane-dense output
            scratch_shapes=[pltpu.VMEM((sum_vp, tb), lhs.dtype)],          # multi-hot scratch
        ),
        compiler_params=pltpu.CompilerParams(
            dimension_semantics=("parallel",)),                            # megacore on v7x
    )(idx, lhs, params["bias"])
    return out[0, :B]


def init_params(key, sparse_feas_dict):
    """Deterministic synthetic parameters (embedding tables + LR weight/bias)."""
    n = len(sparse_feas_dict)
    keys = jax.random.split(key, n + 1)
    tables = []
    for k, fea in zip(keys[:n], sparse_feas_dict):
        tables.append(
            jax.random.normal(k, (fea["vocab_size"], fea["embed_dim"]), jnp.float32) * 0.1
        )
    fm_dims = sum(f["embed_dim"] for f in sparse_feas_dict)
    w = jax.random.normal(keys[n], (fm_dims,), jnp.float32) * 0.1
    b = jnp.zeros((1,), jnp.float32)
    return tables, w, b


if __name__ == "__main__":
    # Feature config consistent with FMModel.__init__ (dense features are constructed by the
    # PyTorch module but unused in forward, which only uses the sparse fm_features).
    sparse_feas_dict = [
        {"name": "user_id", "vocab_size": 100, "embed_dim": 16},
        {"name": "item_id", "vocab_size": 200, "embed_dim": 16},
        {"name": "cate_id", "vocab_size": 50, "embed_dim": 16},
        {"name": "city",    "vocab_size": 80, "embed_dim": 16},
    ]
    dense_feas_dict = [{"name": "price"}]  # unused in FMModel.forward, kept for fidelity

    B = 1024  # -> tb=512, grid of 2 "parallel" steps (exercises pipelining + v7x megacore)
    key = jax.random.PRNGKey(0)
    pkey, xkey = jax.random.split(key)
    tables, w, b = init_params(pkey, sparse_feas_dict)

    # One-time parameter packing (hoisted out of the forward path).
    params = prepare_fm_params(tables, w, b, param_dtype=jnp.bfloat16)

    idx_keys = jax.random.split(xkey, len(sparse_feas_dict))
    sparse_idx = [
        jax.random.randint(k, (B,), 0, fea["vocab_size"], dtype=jnp.int32)
        for k, fea in zip(idx_keys, sparse_feas_dict)
    ]

    y = fm_forward(sparse_idx, params)
    y = jax.block_until_ready(y)
    assert y.shape == (B,)

    D = params["embed_dim"]

    # Reference 1: same math on the same quantized fused matrix (selection is exact, so this
    # should match the kernel to f32 accumulation precision).
    big = params["lhs"].astype(jnp.float32)
    gidx = jnp.stack([i + off for i, off in zip(sparse_idx, params["seg_offsets"])], axis=0)
    cols = big[:, gidx]                                        # (Dp, F, B)
    s1 = cols[:D].sum(axis=1)                                  # (D, B)
    y_lin = cols[D].sum(axis=0) + b[0]                         # (B,)
    sum_sq = cols[D + 1].sum(axis=0)                           # (B,)
    y_q = jax.nn.sigmoid(y_lin + 0.5 * ((s1 * s1).sum(axis=0) - sum_sq))
    assert jnp.allclose(y, y_q, atol=2e-5), float(jnp.max(jnp.abs(y - y_q)))

    # Reference 2: full-f32 PyTorch-equivalent FM math; loose tol covers bf16 param rounding.
    emb = jnp.stack([t[i] for t, i in zip(tables, sparse_idx)], axis=1)    # (B, F, D)
    flat = emb.reshape(B, -1)
    ylin_f32 = flat @ w + b[0]
    s = emb.sum(axis=1)
    sq = (emb * emb).sum(axis=1)
    y_ref = jax.nn.sigmoid(ylin_f32 + 0.5 * (s * s - sq).sum(axis=1))
    assert jnp.allclose(y, y_ref, atol=1e-2), float(jnp.max(jnp.abs(y - y_ref)))

    print("KERNEL_OK")
</pallas_src>

<mosaic_0001>
module attributes {stable_mosaic.version = 11 : i64} {
  func.func @kernel(%arg0: i32, %arg1: memref<4x512xi32, #tpu.memory_space<vmem>>, %arg2: memref<24x640xbf16, #tpu.memory_space<vmem>>, %arg3: memref<1xf32, #tpu.memory_space<smem>>, %arg4: memref<1x512xf32, #tpu.memory_space<vmem>>, %arg5: memref<640x512xbf16, #tpu.memory_space<vmem>>) attributes {dimension_semantics = [#tpu.dimension_semantics<parallel>], iteration_bounds = array<i64: 2>, scalar_prefetch = 0 : i64, scratch_operands = 1 : i64, tpu.core_type = #tpu.core_type<tc>, window_params = [{transform_indices = @transform_0, window_bounds = array<i64: 4, 512>}, {pipeline_mode = #tpu.pipeline_mode<synchronous>, transform_indices = @transform_1, window_bounds = array<i64: 24, 640>}, {transform_indices = @transform_2, window_bounds = array<i64: 1>}, {transform_indices = @transform_3, window_bounds = array<i64: 1, 512>}]} {
    %0 = tpu.iota {dimensions = array<i32: 0>} : vector<128x512xi32>
    %c0 = arith.constant 0 : index
    %c0_0 = arith.constant 0 : index
    %1 = vector.load %arg1[%c0, %c0_0] : memref<4x512xi32, #tpu.memory_space<vmem>>, vector<1x512xi32>
    %2 = vector.broadcast %1 : vector<1x512xi32> to vector<128x512xi32>
    %3 = arith.cmpi eq, %0, %2 : vector<128x512xi32>
    %4 = arith.extui %3 : vector<128x512xi1> to vector<128x512xi32>
    %5 = arith.sitofp %4 : vector<128x512xi32> to vector<128x512xf32>
    %6 = arith.truncf %5 : vector<128x512xf32> to vector<128x512xbf16>
    %c0_1 = arith.constant 0 : index
    %c0_2 = arith.constant 0 : index
    %7 = vector.load %arg5[%c0_1, %c0_2] : memref<640x512xbf16, #tpu.memory_space<vmem>>, vector<128x512xbf16>
    tpu.vector_store %arg5[%c0_1, %c0_2], %6 {strides = array<i32>} : memref<640x512xbf16, #tpu.memory_space<vmem>>, vector<128x512xbf16>,
    %8 = tpu.iota {dimensions = array<i32: 0>} : vector<256x512xi32>
    %c1 = arith.constant 1 : index
    %c0_3 = arith.constant 0 : index
    %9 = vector.load %arg1[%c1, %c0_3] : memref<4x512xi32, #tpu.memory_space<vmem>>, vector<1x512xi32>
    %10 = vector.broadcast %9 : vector<1x512xi32> to vector<256x512xi32>
    %11 = arith.cmpi eq, %8, %10 : vector<256x512xi32>
    %12 = arith.extui %11 : vector<256x512xi1> to vector<256x512xi32>
    %13 = arith.sitofp %12 : vector<256x512xi32> to vector<256x512xf32>
    %14 = arith.truncf %13 : vector<256x512xf32> to vector<256x512xbf16>
    %c128 = arith.constant 128 : index
    %c0_4 = arith.constant 0 : index
    %15 = vector.load %arg5[%c128, %c0_4] : memref<640x512xbf16, #tpu.memory_space<vmem>>, vector<256x512xbf16>
    tpu.vector_store %arg5[%c128, %c0_4], %14 {strides = array<i32>} : memref<640x512xbf16, #tpu.memory_space<vmem>>, vector<256x512xbf16>,
    %16 = tpu.iota {dimensions = array<i32: 0>} : vector<128x512xi32>
    %c2 = arith.constant 2 : index
    %c0_5 = arith.constant 0 : index
    %17 = vector.load %arg1[%c2, %c0_5] : memref<4x512xi32, #tpu.memory_space<vmem>>, vector<1x512xi32>
    %18 = vector.broadcast %17 : vector<1x512xi32> to vector<128x512xi32>
    %19 = arith.cmpi eq, %16, %18 : vector<128x512xi32>
    %20 = arith.extui %19 : vector<128x512xi1> to vector<128x512xi32>
    %21 = arith.sitofp %20 : vector<128x512xi32> to vector<128x512xf32>
    %22 = arith.truncf %21 : vector<128x512xf32> to vector<128x512xbf16>
    %c384 = arith.constant 384 : index
    %c0_6 = arith.constant 0 : index
    %23 = vector.load %arg5[%c384, %c0_6] : memref<640x512xbf16, #tpu.memory_space<vmem>>, vector<128x512xbf16>
    tpu.vector_store %arg5[%c384, %c0_6], %22 {strides = array<i32>} : memref<640x512xbf16, #tpu.memory_space<vmem>>, vector<128x512xbf16>,
    %24 = tpu.iota {dimensions = array<i32: 0>} : vector<128x512xi32>
    %c3 = arith.constant 3 : index
    %c0_7 = arith.constant 0 : index
    %25 = vector.load %arg1[%c3, %c0_7] : memref<4x512xi32, #tpu.memory_space<vmem>>, vector<1x512xi32>
    %26 = vector.broadcast %25 : vector<1x512xi32> to vector<128x512xi32>
    %27 = arith.cmpi eq, %24, %26 : vector<128x512xi32>
    %28 = arith.extui %27 : vector<128x512xi1> to vector<128x512xi32>
    %29 = arith.sitofp %28 : vector<128x512xi32> to vector<128x512xf32>
    %30 = arith.truncf %29 : vector<128x512xf32> to vector<128x512xbf16>
    %c512 = arith.constant 512 : index
    %c0_8 = arith.constant 0 : index
    %31 = vector.load %arg5[%c512, %c0_8] : memref<640x512xbf16, #tpu.memory_space<vmem>>, vector<128x512xbf16>
    tpu.vector_store %arg5[%c512, %c0_8], %30 {strides = array<i32>} : memref<640x512xbf16, #tpu.memory_space<vmem>>, vector<128x512xbf16>,
    %c0_9 = arith.constant 0 : index
    %c0_10 = arith.constant 0 : index
    %32 = vector.load %arg2[%c0_9, %c0_10] : memref<24x640xbf16, #tpu.memory_space<vmem>>, vector<24x640xbf16>
    %c0_11 = arith.constant 0 : index
    %c0_12 = arith.constant 0 : index
    %33 = vector.load %arg5[%c0_11, %c0_12] : memref<640x512xbf16, #tpu.memory_space<vmem>>, vector<640x512xbf16>
    %cst = arith.constant dense<0.000000e+00> : vector<24x512xf32>
    %34 = tpu.matmul %32, %33, %cst {dimension_numbers = #tpu.dot_dimension_numbers<[1], [0], [0], [1], [0, 0, 1, 1], [], []>} : vector<24x640xbf16>, vector<640x512xbf16>, vector<24x512xf32> -> vector<24x512xf32>
    %35 = vector.extract_strided_slice %34 {offsets = [0, 0], sizes = [16, 512], strides = [1, 1]} : vector<24x512xf32> to vector<16x512xf32>
    %36 = vector.extract_strided_slice %34 {offsets = [16, 0], sizes = [1, 512], strides = [1, 1]} : vector<24x512xf32> to vector<1x512xf32>
    %c0_13 = arith.constant 0 : index
    %37 = memref.load %arg3[%c0_13] : memref<1xf32, #tpu.memory_space<smem>>
    %38 = vector.broadcast %37 : f32 to vector<1x512xf32>
    %39 = arith.addf %36, %38 : vector<1x512xf32>
    %40 = vector.extract_strided_slice %34 {offsets = [17, 0], sizes = [1, 512], strides = [1, 1]} : vector<24x512xf32> to vector<1x512xf32>
    %41 = arith.mulf %35, %35 : vector<16x512xf32>
    %cst_14 = arith.constant dense<0.000000e+00> : vector<512xf32>
    %42 = vector.multi_reduction <add>, %41, %cst_14 [0] : vector<16x512xf32> to vector<512xf32>
    %43 = vector.shape_cast %42 : vector<512xf32> to vector<1x512xf32>
    %44 = arith.subf %43, %40 : vector<1x512xf32>
    %cst_15 = arith.constant 5.000000e-01 : f32
    %45 = vector.broadcast %cst_15 : f32 to vector<1x512xf32>
    %46 = arith.mulf %45, %44 : vector<1x512xf32>
    %47 = arith.addf %39, %46 : vector<1x512xf32>
    %48 = arith.negf %47 : vector<1x512xf32>
    %49 = math.exp %48 : vector<1x512xf32>
    %cst_16 = arith.constant 1.000000e+00 : f32
    %50 = vector.broadcast %cst_16 : f32 to vector<1x512xf32>
    %51 = arith.addf %50, %49 : vector<1x512xf32>
    %52 = arith.divf %50, %51 : vector<1x512xf32>
    %c0_17 = arith.constant 0 : index
    %c0_18 = arith.constant 0 : index
    %53 = vector.load %arg4[%c0_17, %c0_18] : memref<1x512xf32, #tpu.memory_space<vmem>>, vector<1x512xf32>
    tpu.vector_store %arg4[%c0_17, %c0_18], %52 {strides = array<i32>} : memref<1x512xf32, #tpu.memory_space<vmem>>, vector<1x512xf32>,
    return
  }
  func.func @transform_0(%arg0: i32) -> (i32, i32) {
    %c0_i32 = arith.constant 0 : i32
    %c0_i32_0 = arith.constant 0 : i32
    return %c0_i32, %arg0 : i32, i32
  }
  func.func @transform_1(%arg0: i32) -> (i32, i32) {
    %c0_i32 = arith.constant 0 : i32
    %c0_i32_0 = arith.constant 0 : i32
    %c0_i32_1 = arith.constant 0 : i32
    return %c0_i32, %c0_i32_0 : i32, i32
  }
  func.func @transform_2(%arg0: i32) -> i32 {
    %c0_i32 = arith.constant 0 : i32
    %c0_i32_0 = arith.constant 0 : i32
    return %c0_i32 : i32
  }
  func.func @transform_3(%arg0: i32) -> (i32, i32) {
    %c0_i32 = arith.constant 0 : i32
    %c0_i32_0 = arith.constant 0 : i32
    return %c0_i32, %arg0 : i32, i32
  }
}

</mosaic_0001>

<bundles_post_ra>
// kernel: tpu_custom_call.1
= control target key start
LH: loop header
LB: loop body
LE: loop exit
PB: predicated region body
PF: predicated region fallthrough
CT: control target
= control target key end

     0   :  { %s4395_s0 = inlined_call_operand.hbm [shape: s32[4,1024], index: 0, kind: input, shape index: {}]   ;;  %s4396_s1 = inlined_call_operand.hbm [shape: bf16[24,640], index: 1, kind: input, shape index: {}]   ;;  %s4397_s2 = inlined_call_operand.<no memory space> [shape: f32[1], index: 2, kind: input, shape index: {}]   ;;  %s4398_s3 = inlined_call_operand.hbm [shape: f32[1,1024], index: 3, kind: output, shape index: {}]  }
   0x1   :  { %8 = sst [smem:[#allocation3]] %s4397_s2 }
   0x2   :  { %9 = vsyncpa [#allocation5], 0 }
   0x3   :  { %11 = vsyncpa [#allocation5 + $0x1], 0 }
   0x4   :  { %12 = vsyncpa [#allocation8], 0 }
   0x5   :  { %13 = vsyncpa [#allocation6], 0 }
   0x6   :  { %15 = vsyncpa [#allocation6 + $0x1], 0  ;;  %s3286_s14 = smov 0   ;;  %s3288_s15 = smov 0  }
   0x7   :  { %s3290_s16 = smov 0   ;;  %s3292_s17 = smov 0  }
   0x8 LB: > { %s3307_s2 = sadd.s32 4294967295, %s3253_s17   ;;  %s2328_s18 = sadd.s32 4294967294, %s3253_s17   ;;  %s3253_s17 = sphi %s3292_s17, %s4418_s17   ;;  %s3249_s16 = sphi %s3290_s16, %s4417_s16   ;;  %s3245_s15 = sphi %s3288_s15, %s4416_s15   ;;  %s3241_s14 = sphi %s3286_s14, %s4415_s14  }
   0x9   : > { %p41_p0 = scmp.ne.s32.totalorder %s3245_s15, %s3241_s14  ;;  %p4399_p1 = scmp.eq.s32.totalorder %s3307_s2, 0 }
   0xa   : > { %p113_p3 = scmp.eq.s32.totalorder %s2328_s18, 1  ;;  %p2329_p5 = scmp.ge.s32.totalorder %s3253_s17, 1 }
   0xb   : > { %p3316_p4 = por %p4399_p1, %p41_p0  ;;  %p120_p7 = scmp.lt.s32.totalorder %s3253_s17, 3 }
   0xc   : > { %p3321_p6 = por %p113_p3, %p41_p0  ;;  %s3255_s22 = smov [#allocation7]  }
   0xd   : > { %s4402_s19 = scalar_select %p3316_p4, 1, 0 }
   0xe   : > { %s4403_s20 = scalar_select %p3321_p6, 1, 0 }
   0xf   : > { %p3326_p8 = pnand %p2329_p5, %p120_p7  ;;  %s132_s23 = sshll.u32 %s3255_s22, 4  ;;  %s3330_s23 = int_to_ptr.vmem [resolvable:$true] %s132_s23 }
  0x10   : > { %s3342_s25 = sadd.s32 1, %s3253_s17   ;;  %s28_s26 = sadd.s32 1, %s3249_s16 }
  0x11   : > { %s4404_s21 = scalar_select %p3326_p8, 1, 0 }
  0x12   : > { %p3043_p9 = pneg %p3326_p8  ;;  %s25_s27 = ssub.s32 %s3253_s17, %s3342_s25 }
  0x13   : > { %s3125_s30 = scalar_lea.hbm %s4396_s1, 960 }
  0x14   : > { %p3337_p11 = pnand %p3043_p9, %p4399_p1  ;;  %p3126_p12 = scmp.ne.s32.totalorder %s4396_s1, %s3125_s30 }
  0x15   : > { %p3132_p5 = scmp.lt.u32.totalorder %s3125_s30, %s4396_s1 }
  0x16   : > { %p3127_p13 = pneg %p3337_p11 }
  0x18   : > { %p3128_p0 = pnand %p3127_p13, %p3126_p12 }
  0x1a   : > { %p3129_p3 = pneg %p3128_p0 }
  0x1c   : > { %p3134_p7 = pnand %p3132_p5, %p3129_p3 }
  0x1e   : > { %3137 = shalt.err (!%p3134_p7)
}
  0x1f   : > { %s3138_s8 = scalar_lea.vmem %s3330_s23, 960  ;;  %p3146_p2 = scmp.lt.s32.totalorder %s3330_s23, %s3330_s23 }
  0x20   : > { %p3139_p9 = scmp.ne.s32.totalorder %s3330_s23, %s3138_s8  ;;  %p3147_p6 = scmp.lt.s32.totalorder %s3138_s8, %s3138_s8 }
  0x22   : > { %p3141_p10 = pnand %p3139_p9, %p3127_p13  ;;  %p3148_p4 = por %p3147_p6, %p3146_p2 }
  0x24   : > { %p3142_p1 = pneg %p3141_p10 }
  0x26   : > { %p3149_p8 = pnand %p3148_p4, %p3142_p1 }
  0x28   : > { %3152 = shalt.err (!%p3149_p8)
}
  0x29   : > { %s3256_s9 = smov 320   ;;  %s3257_s10 = smov 20  }
  0x2a   : > { %3046 = dma.hbm_to_vmem [thread:$0]  (!%p3337_p11), %s4396_s1, 960, %s3330_s23, [#allocation8], %s3256_s9, %s3256_s9, %s3257_s10  }
  0x2b   : > { %p26_p2 = scmp.eq.s32.totalorder %s25_s27, 0  ;;  %p35_p1 = scmp.ne.s32.totalorder %s3249_s16, %s3245_s15 }
  0x2c   : > { %p36_p4 = scmp.eq.s32.totalorder %s3253_s17, 0  ;;  %p3056_p6 = scmp.lt.s32.totalorder %s3253_s17, 2 }
  0x2d   : > { %s3373_s13 = scalar_select %p26_p2, %s3249_s16, %s28_s26  }
  0x2e   : > { %p37_p8 = por %p36_p4, %p35_p1  ;;  %p4406_p10 = scmp.eq.s32.totalorder %s3307_s2, 1 }
  0x2f   : > { %s149_s22 = sand.u32 1, %s3249_s16   ;;  %s2681_s28 = sshll.u32 %s3253_s17, 8 }
  0x30   : > { %p3377_p12 = por %p4406_p10, %p35_p1  ;;  %s2332_s29 = sshll.u32 %s149_s22, 4 }
  0x31   : > { %s3386_s4 = scalar_lea.hbm %s4395_s0, %s2681_s28  ;;  %s153_s23 = scalar_lea.vmem [#allocation4], %s2332_s29 }
  0x32   : > { %s161_s26 = sshll.u32 %s153_s23, 4  ;;  %p3388_p11 = pnand %p3056_p6, %p37_p8  ;;  %s3392_s26 = int_to_ptr.vmem [resolvable:$true] %s161_s26 }
  0x33   : > { %s150_s5 = scalar_lea.sflag [#allocation5], %s149_s22  ;;  %s3153_s6 = scalar_lea.hbm %s3386_s4, 256 }
  0x34   : > { %p3154_p13 = scmp.ne.s32.totalorder %s3386_s4, %s3153_s6  ;;  %p3155_p0 = pneg %p3388_p11 }
  0x35   : > { %s3158_s9 = scalar_lea.hbm %s4395_s0, 512  ;;  %p3159_p7 = scmp.lt.u32.totalorder %s3386_s4, %s4395_s0 }
  0x36   : > { %p3156_p3 = pnand %p3155_p0, %p3154_p13  ;;  %p3160_p9 = scmp.lt.u32.totalorder %s3158_s9, %s3153_s6 }
  0x37   : > { %p3162_p1 = scmp.lt.u32.totalorder %s3153_s6, %s3386_s4 }
  0x38   : > { %p3157_p5 = pneg %p3156_p3  ;;  %p3161_p2 = por %p3160_p9, %p3159_p7 }
  0x3a   : > { %p3163_p4 = por %p3162_p1, %p3161_p2 }
  0x3c   : > { %p3164_p6 = pnand %p3163_p4, %p3157_p5 }
  0x3e   : > { %3167 = shalt.err (!%p3164_p6)
}
  0x3f   : > { %s3168_s12 = scalar_lea.vmem %s3392_s26, 256  ;;  %s3258_s22 = smov [#allocation4]  }
  0x40   : > { %p3169_p8 = scmp.ne.s32.totalorder %s3392_s26, %s3168_s12  ;;  %s3173_s28 = sshll.u32 %s3258_s22, 4  ;;  %s3174_s28 = int_to_ptr.vmem [resolvable:$false] %s3173_s28 }
  0x41   : > { %s3175_s29 = scalar_lea.vmem %s3174_s28, 512  ;;  %p3176_p3 = scmp.lt.s32.totalorder %s3392_s26, %s3174_s28 }
  0x42   : > { %p3171_p10 = pnand %p3169_p8, %p3155_p0  ;;  %p3177_p7 = scmp.lt.s32.totalorder %s3175_s29, %s3168_s12 }
  0x44   : > { %p3172_p13 = pneg %p3171_p10  ;;  %p3178_p9 = por %p3177_p7, %p3176_p3 }
  0x46   : > { %p3179_p2 = pnand %p3178_p9, %p3172_p13 }
  0x48   : > { %3182 = shalt.err (!%p3179_p2)
}
  0x49   : > { %3050 = dma.hbm_to_vmem [thread:$0]  (!%p3388_p11), %s3386_s4, 256, %s3392_s26, %s150_s5  }
  0x4a   : > { %p4409_p5 = scmp.ne.s32.totalorder %s4404_s21, 0 }
  0x4b   : > { %s3422_s24 = sand.u32 (!%p4409_p5), 1, %s3245_s15   ;;  %p4410_p0 = scmp.ne.s32.totalorder (!%p4409_p5), %s4402_s19, 0 }
  0x4c   : > { %170 = sbr.rel (%p4409_p5) target bundleno = 547 (0x223), region = 32  ;;  %s2336_s30 = sshll.u32 (!%p4409_p5), %s3422_s24, 4 }
  0x4d   : > { %s173_s23 = scalar_lea.sflag (!%p4409_p5), [#allocation5], %s3422_s24  ;;  %s3426_s6 = scalar_lea.vmem (!%p4409_p5), [#allocation4], %s2336_s30 }
  0x53   : > { %3228 = dma.done.wait (%p4410_p0), %s173_s23, 256  }
  0x54   : > { %3230 = vsyncadd (%p4410_p0), %s173_s23, 4294967040  ;;  %p4411_p11 = scmp.eq.s32.totalorder %s3307_s2, 0 }
  0x56   : > { %3232 = dma.done.wait (%p4411_p11), [#allocation8], 960   ;;  %p4412_p1 = pmov %p4411_p11 }
  0x57   : > { %v206_v0 = vlaneseq  ;;  %v223_v7 = vld [vmem:[%s3426_s6] ss:$4 sm:$0xf]  ;;  %v3259_v15 = vmov 1.0|1.0   ;;  %s2109_s19 = sld [smem:[#allocation3]] }
  0x58   : > { %3234 = vsyncadd (%p4412_p1), [#allocation8], 4294966336  ;;  %v3099_v14 = vld [vmem:[#allocation7 + $0x4] ss:$20 sps:$4 sm:$0xff]   ;;  %v3097_v37 = vld [vmem:[#allocation7] ss:$20 sps:$4 sm:$0xff]  }
  0x59   : > { %v3437_v1 = vshrl.u32 %v206_v0, 7  ;;  %1835 = vmatprep.mubr.bf16.mxu0 %v3099_v14  ;;  %1988 = vmatprep.mubr.bf16.mxu1 %v3099_v14  ;;  %v2403_v28 = vld [vmem:[%s3426_s6 + $0x1] ss:$4 sm:$0xf]  ;;  %s2338_s21 = sshll.u32 %s3422_s24, 2  ;;  %s2682_s4 = sshll.u32 %s3307_s2, 6 }
  0x5a   : > { %v1596_v38 = vld [vmem:[#allocation7 + $0x28] sm:$0xff]  ;;  %s202_s26 = scalar_lea.vmem [#allocation9], %s2338_s21  ;;  %s4351_s8 = scalar_lea.hbm %s4398_s3, %s2682_s4 }
  0x5b   : > { %v3440_v2 = vsub.s32 1, %v3437_v1  ;;  %v3443_v3 = vsub.s32 3, %v3437_v1  ;;  %v3446_v4 = vsub.s32 0, %v3437_v1  ;;  %v3449_v5 = vsub.s32 2, %v3437_v1  ;;  %v3104_v45 = vld [vmem:[#allocation7 + $0xc] ss:$20 sps:$4 sm:$0xff]  }
  0x5c   : > { %v3452_v6 = vadd.s32 8, %v3437_v1  ;;  %v3462_v10 = vadd.s32 16, %v3437_v1  ;;  %v3465_v11 = vadd.s32 24, %v3437_v1  ;;  %v3495_v16 = vadd.s32 32, %v3437_v1  ;;  %s2248_s27 = sshll.u32 %s202_s26, 4  ;;  %s2234_s9 = scalar_lea.sflag [#allocation6], %s3422_s24  ;;  %s4353_s27 = int_to_ptr.vmem [resolvable:$true] %s2248_s27 }
  0x5d   : > { %v3456_v8 = vrot.slane %v223_v7, %v3440_v2  ;;  %v3459_v9 = vrot.slane %v223_v7, %v3443_v3  ;;  %v3468_v12 = vrot.slane %v223_v7, %v3446_v4  ;;  %v3471_v13 = vrot.slane %v223_v7, %v3449_v5  ;;  %v2532_v54 = vld [vmem:[%s3426_s6 + $0x2] ss:$4 sm:$0xf]  ;;  %v2597_v59 = vld [vmem:[%s3426_s6 + $0x3] ss:$4 sm:$0xf] }
  0x5e   : > { %v3498_v17 = vadd.s32 40, %v3437_v1  ;;  %v3524_v18 = vadd.s32 48, %v3437_v1  ;;  %v3527_v19 = vadd.s32 56, %v3437_v1  ;;  %v3550_v20 = vadd.s32 64, %v3437_v1  ;;  %v3107_v7 = vld [vmem:[#allocation7 + $0x10] ss:$20 sps:$4 sm:$0xff]  }
  0x5f   : > { %vm241_vm0 = vcmp.eq.s32.totalorder %v3437_v1, %v3456_v8  ;;  %vm245_vm1 = vcmp.eq.s32.totalorder %v3452_v6, %v3456_v8  ;;  %vm243_vm2 = vcmp.eq.s32.totalorder %v3437_v1, %v3459_v9  ;;  %vm247_vm3 = vcmp.eq.s32.totalorder %v3452_v6, %v3459_v9  ;;  %s3183_s10 = scalar_lea.vmem %s4353_s27, 64  ;;  %s3262_s2 = smov [#allocation9]  }
  0x60   : > { %vm2683_vm4 = vmpackc.low %vm245_vm1, %vm241_vm0  ;;  %vm240_vm5 = vcmp.eq.s32.totalorder %v3437_v1, %v3468_v12  ;;  %vm244_vm6 = vcmp.eq.s32.totalorder %v3452_v6, %v3468_v12  ;;  %vm242_vm7 = vcmp.eq.s32.totalorder %v3437_v1, %v3471_v13  ;;  %vm246_vm8 = vcmp.eq.s32.totalorder %v3452_v6, %v3471_v13  ;;  %p3184_p4 = scmp.ne.s32.totalorder %s4353_s27, %s3183_s10  ;;  %s3187_s11 = sshll.u32 %s3262_s2, 4  ;;  %s3188_s11 = int_to_ptr.vmem [resolvable:$false] %s3187_s11 }
  0x61   : > { %2684 = vmatprep.subr.msk.bf16.mxu0 %vm2683_vm4, %v3259_v15  ;;  %vm2843_vm9 = vmpackc.low %vm247_vm3, %vm243_vm2  ;;  %vm249_vm10 = vcmp.eq.s32.totalorder %v3462_v10, %v3456_v8  ;;  %vm253_vm11 = vcmp.eq.s32.totalorder %v3465_v11, %v3456_v8  ;;  %vm251_vm13 = vcmp.eq.s32.totalorder %v3462_v10, %v3459_v9  ;;  %vm255_vm14 = vcmp.eq.s32.totalorder %v3465_v11, %v3459_v9  ;;  %s3189_s12 = scalar_lea.vmem %s3188_s11, 128  ;;  %p3190_p10 = scmp.lt.s32.totalorder %s4353_s27, %s3188_s11 }
  0x62   : > { %2844 = vmatprep.subr.msk.bf16.mxu1 %vm2843_vm9, %v3259_v15  ;;  %vm2685_vm12 = vmpackc.low %vm244_vm6, %vm240_vm5  ;;  %vm248_vm0 = vcmp.eq.s32.totalorder %v3462_v10, %v3468_v12  ;;  %vm252_vm1 = vcmp.eq.s32.totalorder %v3465_v11, %v3468_v12  ;;  %vm250_vm3 = vcmp.eq.s32.totalorder %v3462_v10, %v3471_v13  ;;  %vm254_vm4 = vcmp.eq.s32.totalorder %v3465_v11, %v3471_v13  ;;  %p3185_p6 = pnand %p3184_p4, %p3377_p12  ;;  %p3191_p13 = scmp.lt.s32.totalorder %s3189_s12, %s3183_s10 }
  0x63   : > { %2686 = vmatpush1.bf16.msk.msra.mxu0 %vm2685_vm12, %v3259_v15  ;;  %vm2845_vm15 = vmpackc.low %vm246_vm8, %vm242_vm7  ;;  %vm257_vm6 = vcmp.eq.s32.totalorder %v3495_v16, %v3456_v8  ;;  %vm261_vm7 = vcmp.eq.s32.totalorder %v3498_v17, %v3456_v8  ;;  %vm259_vm9 = vcmp.eq.s32.totalorder %v3495_v16, %v3459_v9  ;;  %vm256_vm12 = vcmp.eq.s32.totalorder %v3495_v16, %v3468_v12 }
  0x64   : > { %2846 = vmatpush1.bf16.msk.msra.mxu1 %vm2845_vm15, %v3259_v15  ;;  %vm2687_vm2 = vmpackc.low %vm253_vm11, %vm249_vm10  ;;  %vm263_vm10 = vcmp.eq.s32.totalorder %v3498_v17, %v3459_v9  ;;  %vm258_vm15 = vcmp.eq.s32.totalorder %v3495_v16, %v3471_v13  ;;  %v3553_v21 = vadd.s32 72, %v3437_v1  ;;  %v3576_v22 = vadd.s32 80, %v3437_v1  ;;  %p3186_p8 = pneg %p3185_p6  ;;  %p3192_p3 = por %p3191_p13, %p3190_p10 }
  0x65   : > { %2688 = vmatprep.subr.msk.bf16.mxu0 %vm2687_vm2, %v3259_v15  ;;  %vm2847_vm5 = vmpackc.low %vm255_vm14, %vm251_vm13  ;;  %vm260_vm13 = vcmp.eq.s32.totalorder %v3498_v17, %v3468_v12  ;;  %vm265_vm2 = vcmp.eq.s32.totalorder %v3524_v18, %v3456_v8  ;;  %v3579_v23 = vadd.s32 88, %v3437_v1  ;;  %v3602_v24 = vadd.s32 96, %v3437_v1 }
  0x66   : > { %2848 = vmatprep.subr.msk.bf16.mxu1 %vm2847_vm5, %v3259_v15  ;;  %vm2689_vm8 = vmpackc.low %vm252_vm1, %vm248_vm0  ;;  %vm262_vm0 = vcmp.eq.s32.totalorder %v3498_v17, %v3471_v13  ;;  %vm267_vm5 = vcmp.eq.s32.totalorder %v3524_v18, %v3459_v9  ;;  %v3605_v25 = vadd.s32 104, %v3437_v1  ;;  %v3628_v26 = vadd.s32 112, %v3437_v1  ;;  %p3193_p7 = pnand %p3192_p3, %p3186_p8 }
  0x67   : > { %2690 = vmatpush1.bf16.msk.msra.mxu0 %vm2689_vm8, %v3259_v15  ;;  %vm2849_vm11 = vmpackc.low %vm254_vm4, %vm250_vm3  ;;  %vm269_vm3 = vcmp.eq.s32.totalorder %v3527_v19, %v3456_v8  ;;  %vm264_vm8 = vcmp.eq.s32.totalorder %v3524_v18, %v3468_v12  ;;  %v3631_v27 = vadd.s32 120, %v3437_v1  ;;  %v3650_v29 = vrot.slane %v2403_v28, %v3440_v2 }
  0x68   : > { %2850 = vmatpush1.bf16.msk.msra.mxu1 %vm2849_vm11, %v3259_v15  ;;  %vm2691_vm14 = vmpackc.low %vm261_vm7, %vm257_vm6  ;;  %vm271_vm6 = vcmp.eq.s32.totalorder %v3527_v19, %v3459_v9  ;;  %vm266_vm11 = vcmp.eq.s32.totalorder %v3524_v18, %v3471_v13  ;;  %v3658_v30 = vrot.slane %v2403_v28, %v3443_v3  ;;  %v3666_v31 = vrot.slane %v2403_v28, %v3446_v4 }
  0x69   : > { %2692 = vmatprep.subr.msk.bf16.mxu0 %vm2691_vm14, %v3259_v15  ;;  %vm2851_vm1 = vmpackc.low %vm263_vm10, %vm259_vm9  ;;  %vm268_vm9 = vcmp.eq.s32.totalorder %v3527_v19, %v3468_v12  ;;  %vm273_vm14 = vcmp.eq.s32.totalorder %v3550_v20, %v3456_v8  ;;  %v3674_v32 = vrot.slane %v2403_v28, %v3449_v5  ;;  %v496_v33 = vadd.s32 128, %v3437_v1 }
  0x6a   : > { %2852 = vmatprep.subr.msk.bf16.mxu1 %vm2851_vm1, %v3259_v15  ;;  %vm2693_vm4 = vmpackc.low %vm260_vm13, %vm256_vm12  ;;  %vm270_vm12 = vcmp.eq.s32.totalorder %v3527_v19, %v3471_v13  ;;  %vm275_vm1 = vcmp.eq.s32.totalorder %v3550_v20, %v3459_v9  ;;  %v497_v34 = vadd.s32 136, %v3437_v1  ;;  %v498_v35 = vadd.s32 144, %v3437_v1 }
  0x6b   : > { %2694 = vmatpush1.bf16.msk.msra.mxu0 %vm2693_vm4, %v3259_v15  ;;  %vm2853_vm7 = vmpackc.low %vm262_vm0, %vm258_vm15  ;;  %vm277_vm15 = vcmp.eq.s32.totalorder %v3553_v21, %v3456_v8  ;;  %vm272_vm4 = vcmp.eq.s32.totalorder %v3550_v20, %v3468_v12  ;;  %v499_v36 = vadd.s32 152, %v3437_v1  ;;  %v500_v39 = vadd.s32 160, %v3437_v1 }
  0x6c   : > { %2854 = vmatpush1.bf16.msk.msra.mxu1 %vm2853_vm7, %v3259_v15  ;;  %vm2695_vm10 = vmpackc.low %vm269_vm3, %vm265_vm2  ;;  %vm279_vm2 = vcmp.eq.s32.totalorder %v3553_v21, %v3459_v9  ;;  %vm274_vm7 = vcmp.eq.s32.totalorder %v3550_v20, %v3471_v13  ;;  %v501_v40 = vadd.s32 168, %v3437_v1  ;;  %v2668_v41 = vcombine.high %v1596_v38, %v1596_v38 }
  0x6d   : > { %2696 = vmatprep.subr.msk.bf16.mxu0 %vm2695_vm10, %v3259_v15  ;;  %vm2855_vm13 = vmpackc.low %vm271_vm6, %vm267_vm5  ;;  %vm276_vm5 = vcmp.eq.s32.totalorder %v3553_v21, %v3468_v12  ;;  %vm281_vm10 = vcmp.eq.s32.totalorder %v3576_v22, %v3456_v8  ;;  %v502_v42 = vadd.s32 176, %v3437_v1  ;;  %v503_v43 = vadd.s32 184, %v3437_v1 }
  0x6e   : > { %2856 = vmatprep.subr.msk.bf16.mxu1 %vm2855_vm13, %v3259_v15  ;;  %vm2697_vm0 = vmpackc.low %vm268_vm9, %vm264_vm8  ;;  %vm278_vm8 = vcmp.eq.s32.totalorder %v3553_v21, %v3471_v13  ;;  %vm283_vm13 = vcmp.eq.s32.totalorder %v3576_v22, %v3459_v9  ;;  %v2667_v44 = vcombine.low %v1596_v38, %v1596_v38  ;;  %v504_v46 = vadd.s32 192, %v3437_v1 }
  0x6f   : > { %2698 = vmatpush1.bf16.msk.msra.mxu0 %vm2697_vm0, %v3259_v15  ;;  %vm2857_vm3 = vmpackc.low %vm270_vm12, %vm266_vm11  ;;  %vm285_vm11 = vcmp.eq.s32.totalorder %v3579_v23, %v3456_v8  ;;  %vm280_vm0 = vcmp.eq.s32.totalorder %v3576_v22, %v3468_v12  ;;  %v505_v47 = vadd.s32 200, %v3437_v1  ;;  %v506_v48 = vadd.s32 208, %v3437_v1 }
  0x70   : > { %2858 = vmatpush1.bf16.msk.msra.mxu1 %vm2857_vm3, %v3259_v15  ;;  %vm2699_vm6 = vmpackc.low %vm277_vm15, %vm273_vm14  ;;  %vm287_vm14 = vcmp.eq.s32.totalorder %v3579_v23, %v3459_v9  ;;  %vm282_vm3 = vcmp.eq.s32.totalorder %v3576_v22, %v3471_v13  ;;  %v507_v49 = vadd.s32 216, %v3437_v1  ;;  %v508_v50 = vadd.s32 224, %v3437_v1 }
  0x71   : > { %2700 = vmatprep.subr.msk.bf16.mxu0 %vm2699_vm6, %v3259_v15  ;;  %vm2859_vm9 = vmpackc.low %vm279_vm2, %vm275_vm1  ;;  %vm284_vm1 = vcmp.eq.s32.totalorder %v3579_v23, %v3468_v12  ;;  %vm289_vm6 = vcmp.eq.s32.totalorder %v3602_v24, %v3456_v8  ;;  %v509_v51 = vadd.s32 232, %v3437_v1  ;;  %v510_v52 = vadd.s32 240, %v3437_v1 }
  0x72   : > { %2860 = vmatprep.subr.msk.bf16.mxu1 %vm2859_vm9, %v3259_v15  ;;  %vm2701_vm12 = vmpackc.low %vm276_vm5, %vm272_vm4  ;;  %vm286_vm4 = vcmp.eq.s32.totalorder %v3579_v23, %v3471_v13  ;;  %vm291_vm9 = vcmp.eq.s32.totalorder %v3602_v24, %v3459_v9  ;;  %v511_v53 = vadd.s32 248, %v3437_v1  ;;  %v3977_v55 = vrot.slane %v2532_v54, %v3440_v2 }
  0x73   : > { %2702 = vmatpush1.bf16.msk.msra.mxu0 %vm2701_vm12, %v3259_v15  ;;  %vm2861_vm15 = vmpackc.low %vm278_vm8, %vm274_vm7  ;;  %vm293_vm7 = vcmp.eq.s32.totalorder %v3605_v25, %v3456_v8  ;;  %vm288_vm12 = vcmp.eq.s32.totalorder %v3602_v24, %v3468_v12  ;;  %v3983_v56 = vrot.slane %v2532_v54, %v3443_v3  ;;  %v3989_v57 = vrot.slane %v2532_v54, %v3446_v4 }
  0x74   : > { %2862 = vmatpush1.bf16.msk.msra.mxu1 %vm2861_vm15, %v3259_v15  ;;  %vm2703_vm2 = vmpackc.low %vm285_vm11, %vm281_vm10  ;;  %vm295_vm10 = vcmp.eq.s32.totalorder %v3605_v25, %v3459_v9  ;;  %vm290_vm15 = vcmp.eq.s32.totalorder %v3602_v24, %v3471_v13  ;;  %v3995_v58 = vrot.slane %v2532_v54, %v3449_v5  ;;  %v4144_v60 = vrot.slane %v2597_v59, %v3440_v2  ;;  %v1597_v2 = vld [vmem:[#allocation7 + $0x30] sm:$0xff] }
  0x75   : > { %2704 = vmatprep.subr.msk.bf16.mxu0 %vm2703_vm2, %v3259_v15  ;;  %vm2863_vm5 = vmpackc.low %vm287_vm14, %vm283_vm13  ;;  %vm292_vm13 = vcmp.eq.s32.totalorder %v3605_v25, %v3468_v12  ;;  %vm297_vm2 = vcmp.eq.s32.totalorder %v3628_v26, %v3456_v8  ;;  %v4152_v61 = vrot.slane %v2597_v59, %v3443_v3  ;;  %v4160_v62 = vrot.slane %v2597_v59, %v3446_v4  ;;  %v3102_v3 = vld [vmem:[#allocation7 + $0x8] ss:$20 sps:$4 sm:$0xff]  }
  0x76   : > { %2864 = vmatprep.subr.msk.bf16.mxu1 %vm2863_vm5, %v3259_v15  ;;  %vm2705_vm8 = vmpackc.low %vm284_vm1, %vm280_vm0  ;;  %vm294_vm0 = vcmp.eq.s32.totalorder %v3605_v25, %v3471_v13  ;;  %vm299_vm5 = vcmp.eq.s32.totalorder %v3628_v26, %v3459_v9  ;;  %v4168_v63 = vrot.slane %v2597_v59, %v3449_v5  ;;  %v2670_v4 = vcombine.high %v1597_v2, %v1597_v2 }
  0x77   : > { %2706 = vmatpush1.bf16.msk.msra.mxu0 %vm2705_vm8, %v3259_v15  ;;  %vm2865_vm11 = vmpackc.low %vm286_vm4, %vm282_vm3  ;;  %vm301_vm3 = vcmp.eq.s32.totalorder %v3631_v27, %v3456_v8  ;;  %vm296_vm8 = vcmp.eq.s32.totalorder %v3628_v26, %v3468_v12  ;;  %v2669_v5 = vcombine.low %v1597_v2, %v1597_v2  ;;  %v3108_v8 = vld [vmem:[#allocation7 + $0x38] ss:$0 sps:$4 sm:$0xff]  }
  0x78   : > { %2866 = vmatpush1.bf16.msk.msra.mxu1 %vm2865_vm11, %v3259_v15  ;;  %vm2707_vm14 = vmpackc.low %vm293_vm7, %vm289_vm6  ;;  %vm303_vm6 = vcmp.eq.s32.totalorder %v3631_v27, %v3459_v9  ;;  %vm298_vm11 = vcmp.eq.s32.totalorder %v3628_v26, %v3471_v13 }
  0x79   : > { %2708 = vmatprep.subr.msk.bf16.mxu0 %vm2707_vm14, %v3259_v15  ;;  %vm2867_vm1 = vmpackc.low %vm295_vm10, %vm291_vm9  ;;  %vm300_vm9 = vcmp.eq.s32.totalorder %v3631_v27, %v3468_v12  ;;  %vm531_vm14 = vcmp.eq.s32.totalorder %v3437_v1, %v3650_v29 }
  0x7a   : > { %2868 = vmatprep.subr.msk.bf16.mxu1 %vm2867_vm1, %v3259_v15  ;;  %vm2709_vm4 = vmpackc.low %vm292_vm13, %vm288_vm12  ;;  %vm302_vm12 = vcmp.eq.s32.totalorder %v3631_v27, %v3471_v13  ;;  %vm533_vm1 = vcmp.eq.s32.totalorder %v3437_v1, %v3658_v30 }
  0x7b   : > { %2710 = vmatpush1.bf16.msk.msra.mxu0 %vm2709_vm4, %v3259_v15  ;;  %vm2869_vm7 = vmpackc.low %vm294_vm0, %vm290_vm15  ;;  %vm535_vm15 = vcmp.eq.s32.totalorder %v3452_v6, %v3650_v29  ;;  %vm530_vm4 = vcmp.eq.s32.totalorder %v3437_v1, %v3666_v31 }
  0x7c   : > { %2870 = vmatpush1.bf16.msk.msra.mxu1 %vm2869_vm7, %v3259_v15  ;;  %vm2711_vm10 = vmpackc.low %vm301_vm3, %vm297_vm2  ;;  %vm537_vm2 = vcmp.eq.s32.totalorder %v3452_v6, %v3658_v30  ;;  %vm532_vm7 = vcmp.eq.s32.totalorder %v3437_v1, %v3674_v32 }
  0x7d   : > { %2712 = vmatprep.subr.msk.bf16.mxu0 %vm2711_vm10, %v3259_v15  ;;  %vm2871_vm13 = vmpackc.low %vm303_vm6, %vm299_vm5  ;;  %vm534_vm5 = vcmp.eq.s32.totalorder %v3452_v6, %v3666_v31  ;;  %vm539_vm10 = vcmp.eq.s32.totalorder %v3462_v10, %v3650_v29 }
  0x7e   : > { %2872 = vmatprep.subr.msk.bf16.mxu1 %vm2871_vm13, %v3259_v15  ;;  %vm2713_vm0 = vmpackc.low %vm300_vm9, %vm296_vm8  ;;  %vm536_vm8 = vcmp.eq.s32.totalorder %v3452_v6, %v3674_v32  ;;  %vm541_vm13 = vcmp.eq.s32.totalorder %v3462_v10, %v3658_v30 }
  0x7f   : > { %2714 = vmatpush1.bf16.msk.msra.mxu0 %vm2713_vm0, %v3259_v15  ;;  %vm2873_vm3 = vmpackc.low %vm302_vm12, %vm298_vm11  ;;  %vm543_vm11 = vcmp.eq.s32.totalorder %v3465_v11, %v3650_v29  ;;  %vm538_vm0 = vcmp.eq.s32.totalorder %v3462_v10, %v3666_v31 }
  0x80   : > { %2874 = vmatpush1.bf16.msk.msra.mxu1 %vm2873_vm3, %v3259_v15  ;;  %vm2715_vm6 = vmpackc.low %vm535_vm15, %vm531_vm14  ;;  %vm545_vm14 = vcmp.eq.s32.totalorder %v3465_v11, %v3658_v30  ;;  %vm540_vm3 = vcmp.eq.s32.totalorder %v3462_v10, %v3674_v32 }
  0x81   : > { %2716 = vmatprep.subr.msk.bf16.mxu0 %vm2715_vm6, %v3259_v15  ;;  %vm2875_vm9 = vmpackc.low %vm537_vm2, %vm533_vm1  ;;  %vm542_vm1 = vcmp.eq.s32.totalorder %v3465_v11, %v3666_v31  ;;  %vm547_vm6 = vcmp.eq.s32.totalorder %v3495_v16, %v3650_v29 }
  0x82   : > { %2876 = vmatprep.subr.msk.bf16.mxu1 %vm2875_vm9, %v3259_v15  ;;  %vm2717_vm12 = vmpackc.low %vm534_vm5, %vm530_vm4  ;;  %vm544_vm4 = vcmp.eq.s32.totalorder %v3465_v11, %v3674_v32  ;;  %vm549_vm9 = vcmp.eq.s32.totalorder %v3495_v16, %v3658_v30 }
  0x83   : > { %2718 = vmatpush1.bf16.msk.msra.mxu0 %vm2717_vm12, %v3259_v15  ;;  %vm2877_vm15 = vmpackc.low %vm536_vm8, %vm532_vm7  ;;  %vm551_vm7 = vcmp.eq.s32.totalorder %v3498_v17, %v3650_v29  ;;  %vm546_vm12 = vcmp.eq.s32.totalorder %v3495_v16, %v3666_v31 }
  0x84   : > { %2878 = vmatpush1.bf16.msk.msra.mxu1 %vm2877_vm15, %v3259_v15  ;;  %vm2719_vm2 = vmpackc.low %vm543_vm11, %vm539_vm10  ;;  %vm553_vm10 = vcmp.eq.s32.totalorder %v3498_v17, %v3658_v30  ;;  %vm548_vm15 = vcmp.eq.s32.totalorder %v3495_v16, %v3674_v32 }
  0x85   : > { %2720 = vmatprep.subr.msk.bf16.mxu0 %vm2719_vm2, %v3259_v15  ;;  %vm2879_vm5 = vmpackc.low %vm545_vm14, %vm541_vm13  ;;  %vm550_vm13 = vcmp.eq.s32.totalorder %v3498_v17, %v3666_v31  ;;  %vm555_vm2 = vcmp.eq.s32.totalorder %v3524_v18, %v3650_v29 }
  0x86   : > { %2880 = vmatprep.subr.msk.bf16.mxu1 %vm2879_vm5, %v3259_v15  ;;  %vm2721_vm8 = vmpackc.low %vm542_vm1, %vm538_vm0  ;;  %vm552_vm0 = vcmp.eq.s32.totalorder %v3498_v17, %v3674_v32  ;;  %vm557_vm5 = vcmp.eq.s32.totalorder %v3524_v18, %v3658_v30 }
  0x87   : > { %2722 = vmatpush1.bf16.msk.msra.mxu0 %vm2721_vm8, %v3259_v15  ;;  %vm2881_vm11 = vmpackc.low %vm544_vm4, %vm540_vm3  ;;  %vm559_vm3 = vcmp.eq.s32.totalorder %v3527_v19, %v3650_v29  ;;  %vm554_vm8 = vcmp.eq.s32.totalorder %v3524_v18, %v3666_v31 }
  0x88   : > { %2882 = vmatpush1.bf16.msk.msra.mxu1 %vm2881_vm11, %v3259_v15  ;;  %vm2723_vm14 = vmpackc.low %vm551_vm7, %vm547_vm6  ;;  %vm561_vm6 = vcmp.eq.s32.totalorder %v3527_v19, %v3658_v30  ;;  %vm556_vm11 = vcmp.eq.s32.totalorder %v3524_v18, %v3674_v32 }
  0x89   : > { %2724 = vmatprep.subr.msk.bf16.mxu0 %vm2723_vm14, %v3259_v15  ;;  %vm2883_vm1 = vmpackc.low %vm553_vm10, %vm549_vm9  ;;  %vm558_vm9 = vcmp.eq.s32.totalorder %v3527_v19, %v3666_v31  ;;  %vm563_vm14 = vcmp.eq.s32.totalorder %v3550_v20, %v3650_v29 }
  0x8a   : > { %2884 = vmatprep.subr.msk.bf16.mxu1 %vm2883_vm1, %v3259_v15  ;;  %vm2725_vm4 = vmpackc.low %vm550_vm13, %vm546_vm12  ;;  %vm560_vm12 = vcmp.eq.s32.totalorder %v3527_v19, %v3674_v32  ;;  %vm565_vm1 = vcmp.eq.s32.totalorder %v3550_v20, %v3658_v30 }
  0x8b   : > { %2726 = vmatpush1.bf16.msk.msra.mxu0 %vm2725_vm4, %v3259_v15  ;;  %vm2885_vm7 = vmpackc.low %vm552_vm0, %vm548_vm15  ;;  %vm567_vm15 = vcmp.eq.s32.totalorder %v3553_v21, %v3650_v29  ;;  %vm562_vm4 = vcmp.eq.s32.totalorder %v3550_v20, %v3666_v31 }
  0x8c   : > { %2886 = vmatpush1.bf16.msk.msra.mxu1 %vm2885_vm7, %v3259_v15  ;;  %vm2727_vm10 = vmpackc.low %vm559_vm3, %vm555_vm2  ;;  %vm569_vm2 = vcmp.eq.s32.totalorder %v3553_v21, %v3658_v30  ;;  %vm564_vm7 = vcmp.eq.s32.totalorder %v3550_v20, %v3674_v32 }
  0x8d   : > { %2728 = vmatprep.subr.msk.bf16.mxu0 %vm2727_vm10, %v3259_v15  ;;  %vm2887_vm13 = vmpackc.low %vm561_vm6, %vm557_vm5  ;;  %vm566_vm5 = vcmp.eq.s32.totalorder %v3553_v21, %v3666_v31  ;;  %vm571_vm10 = vcmp.eq.s32.totalorder %v3576_v22, %v3650_v29 }
  0x8e   : > { %2888 = vmatprep.subr.msk.bf16.mxu1 %vm2887_vm13, %v3259_v15  ;;  %vm2729_vm0 = vmpackc.low %vm558_vm9, %vm554_vm8  ;;  %vm568_vm8 = vcmp.eq.s32.totalorder %v3553_v21, %v3674_v32  ;;  %vm573_vm13 = vcmp.eq.s32.totalorder %v3576_v22, %v3658_v30 }
  0x8f   : > { %2730 = vmatpush1.bf16.msk.msra.mxu0 %vm2729_vm0, %v3259_v15  ;;  %vm2889_vm3 = vmpackc.low %vm560_vm12, %vm556_vm11  ;;  %vm575_vm11 = vcmp.eq.s32.totalorder %v3579_v23, %v3650_v29  ;;  %vm570_vm0 = vcmp.eq.s32.totalorder %v3576_v22, %v3666_v31 }
  0x90   : > { %2890 = vmatpush1.bf16.msk.msra.mxu1 %vm2889_vm3, %v3259_v15  ;;  %vm2731_vm6 = vmpackc.low %vm567_vm15, %vm563_vm14  ;;  %vm577_vm14 = vcmp.eq.s32.totalorder %v3579_v23, %v3658_v30  ;;  %vm572_vm3 = vcmp.eq.s32.totalorder %v3576_v22, %v3674_v32 }
  0x91   : > { %2732 = vmatprep.subr.msk.bf16.mxu0 %vm2731_vm6, %v3259_v15  ;;  %vm2891_vm9 = vmpackc.low %vm569_vm2, %vm565_vm1  ;;  %vm574_vm1 = vcmp.eq.s32.totalorder %v3579_v23, %v3666_v31  ;;  %vm579_vm6 = vcmp.eq.s32.totalorder %v3602_v24, %v3650_v29 }
  0x92   : > { %2892 = vmatprep.subr.msk.bf16.mxu1 %vm2891_vm9, %v3259_v15  ;;  %vm2733_vm12 = vmpackc.low %vm566_vm5, %vm562_vm4  ;;  %vm576_vm4 = vcmp.eq.s32.totalorder %v3579_v23, %v3674_v32  ;;  %vm581_vm9 = vcmp.eq.s32.totalorder %v3602_v24, %v3658_v30 }
  0x93   : > { %2734 = vmatpush1.bf16.msk.msra.mxu0 %vm2733_vm12, %v3259_v15  ;;  %vm2893_vm15 = vmpackc.low %vm568_vm8, %vm564_vm7  ;;  %vm583_vm7 = vcmp.eq.s32.totalorder %v3605_v25, %v3650_v29  ;;  %vm578_vm12 = vcmp.eq.s32.totalorder %v3602_v24, %v3666_v31 }
  0x94   : > { %2894 = vmatpush1.bf16.msk.msra.mxu1 %vm2893_vm15, %v3259_v15  ;;  %vm2735_vm2 = vmpackc.low %vm575_vm11, %vm571_vm10  ;;  %vm585_vm10 = vcmp.eq.s32.totalorder %v3605_v25, %v3658_v30  ;;  %vm580_vm15 = vcmp.eq.s32.totalorder %v3602_v24, %v3674_v32 }
  0x95   : > { %2736 = vmatprep.subr.msk.bf16.mxu0 %vm2735_vm2, %v3259_v15  ;;  %vm2895_vm5 = vmpackc.low %vm577_vm14, %vm573_vm13  ;;  %vm582_vm13 = vcmp.eq.s32.totalorder %v3605_v25, %v3666_v31  ;;  %vm587_vm2 = vcmp.eq.s32.totalorder %v3628_v26, %v3650_v29 }
  0x96   : > { %2896 = vmatprep.subr.msk.bf16.mxu1 %vm2895_vm5, %v3259_v15  ;;  %vm2737_vm8 = vmpackc.low %vm574_vm1, %vm570_vm0  ;;  %vm584_vm0 = vcmp.eq.s32.totalorder %v3605_v25, %v3674_v32  ;;  %vm589_vm5 = vcmp.eq.s32.totalorder %v3628_v26, %v3658_v30 }
  0x97   : > { %2738 = vmatpush1.bf16.msk.msra.mxu0 %vm2737_vm8, %v3259_v15  ;;  %vm2897_vm11 = vmpackc.low %vm576_vm4, %vm572_vm3  ;;  %vm591_vm3 = vcmp.eq.s32.totalorder %v3631_v27, %v3650_v29  ;;  %vm586_vm8 = vcmp.eq.s32.totalorder %v3628_v26, %v3666_v31 }
  0x98   : > { %2898 = vmatpush1.bf16.msk.msra.mxu1 %vm2897_vm11, %v3259_v15  ;;  %vm2739_vm14 = vmpackc.low %vm583_vm7, %vm579_vm6  ;;  %vm593_vm6 = vcmp.eq.s32.totalorder %v3631_v27, %v3658_v30  ;;  %vm588_vm11 = vcmp.eq.s32.totalorder %v3628_v26, %v3674_v32 }
  0x99   : > { %2740 = vmatprep.subr.msk.bf16.mxu0 %vm2739_vm14, %v3259_v15  ;;  %vm2899_vm1 = vmpackc.low %vm585_vm10, %vm581_vm9  ;;  %vm590_vm9 = vcmp.eq.s32.totalorder %v3631_v27, %v3666_v31  ;;  %vm595_vm14 = vcmp.eq.s32.totalorder %v496_v33, %v3650_v29 }
  0x9a   : > { %2900 = vmatprep.subr.msk.bf16.mxu1 %vm2899_vm1, %v3259_v15  ;;  %vm2741_vm4 = vmpackc.low %vm582_vm13, %vm578_vm12  ;;  %vm592_vm12 = vcmp.eq.s32.totalorder %v3631_v27, %v3674_v32  ;;  %vm597_vm1 = vcmp.eq.s32.totalorder %v496_v33, %v3658_v30 }
  0x9b   : > { %2742 = vmatpush1.bf16.msk.msra.mxu0 %vm2741_vm4, %v3259_v15  ;;  %vm2901_vm7 = vmpackc.low %vm584_vm0, %vm580_vm15  ;;  %vm599_vm15 = vcmp.eq.s32.totalorder %v497_v34, %v3650_v29  ;;  %vm594_vm4 = vcmp.eq.s32.totalorder %v496_v33, %v3666_v31 }
  0x9c   : > { %2902 = vmatpush1.bf16.msk.msra.mxu1 %vm2901_vm7, %v3259_v15  ;;  %vm2743_vm10 = vmpackc.low %vm591_vm3, %vm587_vm2  ;;  %vm601_vm2 = vcmp.eq.s32.totalorder %v497_v34, %v3658_v30  ;;  %vm596_vm7 = vcmp.eq.s32.totalorder %v496_v33, %v3674_v32 }
  0x9d   : > { %2744 = vmatprep.subr.msk.bf16.mxu0 %vm2743_vm10, %v3259_v15  ;;  %vm2903_vm13 = vmpackc.low %vm593_vm6, %vm589_vm5  ;;  %vm598_vm5 = vcmp.eq.s32.totalorder %v497_v34, %v3666_v31  ;;  %vm603_vm10 = vcmp.eq.s32.totalorder %v498_v35, %v3650_v29 }
  0x9e   : > { %2904 = vmatprep.subr.msk.bf16.mxu1 %vm2903_vm13, %v3259_v15  ;;  %vm2745_vm0 = vmpackc.low %vm590_vm9, %vm586_vm8  ;;  %vm600_vm8 = vcmp.eq.s32.totalorder %v497_v34, %v3674_v32  ;;  %vm605_vm13 = vcmp.eq.s32.totalorder %v498_v35, %v3658_v30 }
  0x9f   : > { %2746 = vmatpush1.bf16.msk.msra.mxu0 %vm2745_vm0, %v3259_v15  ;;  %vm2905_vm3 = vmpackc.low %vm592_vm12, %vm588_vm11  ;;  %vm607_vm11 = vcmp.eq.s32.totalorder %v499_v36, %v3650_v29  ;;  %vm602_vm0 = vcmp.eq.s32.totalorder %v498_v35, %v3666_v31 }
  0xa0   : > { %2906 = vmatpush1.bf16.msk.msra.mxu1 %vm2905_vm3, %v3259_v15  ;;  %vm2747_vm6 = vmpackc.low %vm599_vm15, %vm595_vm14  ;;  %vm609_vm14 = vcmp.eq.s32.totalorder %v499_v36, %v3658_v30  ;;  %vm604_vm3 = vcmp.eq.s32.totalorder %v498_v35, %v3674_v32 }
  0xa1   : > { %2748 = vmatprep.subr.msk.bf16.mxu0 %vm2747_vm6, %v3259_v15  ;;  %vm2907_vm9 = vmpackc.low %vm601_vm2, %vm597_vm1  ;;  %vm606_vm1 = vcmp.eq.s32.totalorder %v499_v36, %v3666_v31  ;;  %vm611_vm6 = vcmp.eq.s32.totalorder %v500_v39, %v3650_v29 }
  0xa2   : > { %2908 = vmatprep.subr.msk.bf16.mxu1 %vm2907_vm9, %v3259_v15  ;;  %1836 = vmatmul.mubr.bf16.vlgmr.msra.gmra.mrb[0].mxu0 %v3097_v37  ;;  %vm2749_vm12 = vmpackc.low %vm598_vm5, %vm594_vm4  ;;  %vm608_vm4 = vcmp.eq.s32.totalorder %v499_v36, %v3674_v32  ;;  %vm613_vm9 = vcmp.eq.s32.totalorder %v500_v39, %v3658_v30 }
  0xa3   : > { %2750 = vmatpush1.bf16.msk.msra.mxu0 %vm2749_vm12, %v3259_v15  ;;  %1989 = vmatmul.mubr.bf16.vlgmr.msra.gmra.mrb[0].mxu1 %v3097_v37  ;;  %vm2909_vm15 = vmpackc.low %vm600_vm8, %vm596_vm7  ;;  %vm615_vm7 = vcmp.eq.s32.totalorder %v501_v40, %v3650_v29  ;;  %vm610_vm12 = vcmp.eq.s32.totalorder %v500_v39, %v3666_v31 }
  0xa4   : > { %2910 = vmatpush1.bf16.msk.msra.mxu1 %vm2909_vm15, %v3259_v15  ;;  %vm2751_vm2 = vmpackc.low %vm607_vm11, %vm603_vm10  ;;  %1845 = vmatprep.mubr.bf16.mxu0 %v2668_v41  ;;  %vm617_vm10 = vcmp.eq.s32.totalorder %v501_v40, %v3658_v30  ;;  %vm612_vm15 = vcmp.eq.s32.totalorder %v500_v39, %v3674_v32 }
  0xa5   : > { %2752 = vmatprep.subr.msk.bf16.mxu0 %vm2751_vm2, %v3259_v15  ;;  %vm2911_vm5 = vmpackc.low %vm609_vm14, %vm605_vm13  ;;  %1998 = vmatprep.mubr.bf16.mxu1 %v2668_v41  ;;  %vm614_vm13 = vcmp.eq.s32.totalorder %v501_v40, %v3666_v31  ;;  %vm619_vm2 = vcmp.eq.s32.totalorder %v502_v42, %v3650_v29 }
  0xa6   : > { %2912 = vmatprep.subr.msk.bf16.mxu1 %vm2911_vm5, %v3259_v15  ;;  %vm2753_vm8 = vmpackc.low %vm606_vm1, %vm602_vm0  ;;  %vm616_vm0 = vcmp.eq.s32.totalorder %v501_v40, %v3674_v32  ;;  %vm621_vm5 = vcmp.eq.s32.totalorder %v502_v42, %v3658_v30 }
  0xa7   : > { %2754 = vmatpush1.bf16.msk.msra.mxu0 %vm2753_vm8, %v3259_v15  ;;  %vm2913_vm11 = vmpackc.low %vm608_vm4, %vm604_vm3  ;;  %vm623_vm3 = vcmp.eq.s32.totalorder %v503_v43, %v3650_v29  ;;  %vm618_vm8 = vcmp.eq.s32.totalorder %v502_v42, %v3666_v31 }
  0xa8   : > { %2914 = vmatpush1.bf16.msk.msra.mxu1 %vm2913_vm11, %v3259_v15  ;;  %vm2755_vm14 = vmpackc.low %vm615_vm7, %vm611_vm6  ;;  %vm625_vm6 = vcmp.eq.s32.totalorder %v503_v43, %v3658_v30  ;;  %vm620_vm11 = vcmp.eq.s32.totalorder %v502_v42, %v3674_v32 }
  0xa9   : > { %2756 = vmatprep.subr.msk.bf16.mxu0 %vm2755_vm14, %v3259_v15  ;;  %vm2915_vm1 = vmpackc.low %vm617_vm10, %vm613_vm9  ;;  %vm622_vm9 = vcmp.eq.s32.totalorder %v503_v43, %v3666_v31  ;;  %vm627_vm14 = vcmp.eq.s32.totalorder %v504_v46, %v3650_v29 }
  0xaa   : > { %2916 = vmatprep.subr.msk.bf16.mxu1 %vm2915_vm1, %v3259_v15  ;;  %vm2757_vm4 = vmpackc.low %vm614_vm13, %vm610_vm12  ;;  %1846 = vmatmul.mubr.bf16.gmra.mrb[4].mxu0 %v2667_v44  ;;  %vm624_vm12 = vcmp.eq.s32.totalorder %v503_v43, %v3674_v32  ;;  %vm629_vm1 = vcmp.eq.s32.totalorder %v504_v46, %v3658_v30 }
  0xab   : > { %2758 = vmatpush1.bf16.msk.msra.mxu0 %vm2757_vm4, %v3259_v15  ;;  %vm2917_vm7 = vmpackc.low %vm616_vm0, %vm612_vm15  ;;  %1999 = vmatmul.mubr.bf16.gmra.mrb[4].mxu1 %v2667_v44  ;;  %vm631_vm15 = vcmp.eq.s32.totalorder %v505_v47, %v3650_v29  ;;  %vm626_vm4 = vcmp.eq.s32.totalorder %v504_v46, %v3666_v31 }
  0xac   : > { %2918 = vmatpush1.bf16.msk.msra.mxu1 %vm2917_vm7, %v3259_v15  ;;  %vm2759_vm10 = vmpackc.low %vm623_vm3, %vm619_vm2  ;;  %1886 = vmatprep.mubr.bf16.mxu0 %v3104_v45  ;;  %vm633_vm2 = vcmp.eq.s32.totalorder %v505_v47, %v3658_v30  ;;  %vm628_vm7 = vcmp.eq.s32.totalorder %v504_v46, %v3674_v32 }
  0xad   : > { %2760 = vmatprep.subr.msk.bf16.mxu0 %vm2759_vm10, %v3259_v15  ;;  %vm2919_vm13 = vmpackc.low %vm625_vm6, %vm621_vm5  ;;  %2039 = vmatprep.mubr.bf16.mxu1 %v3104_v45  ;;  %vm630_vm5 = vcmp.eq.s32.totalorder %v505_v47, %v3666_v31  ;;  %vm635_vm10 = vcmp.eq.s32.totalorder %v506_v48, %v3650_v29 }
  0xae   : > { %2920 = vmatprep.subr.msk.bf16.mxu1 %vm2919_vm13, %v3259_v15  ;;  %vm2761_vm0 = vmpackc.low %vm622_vm9, %vm618_vm8  ;;  %vm632_vm8 = vcmp.eq.s32.totalorder %v505_v47, %v3674_v32  ;;  %vm639_vm13 = vcmp.eq.s32.totalorder %v507_v49, %v3650_v29 }
  0xaf   : > { %2762 = vmatpush1.bf16.msk.msra.mxu0 %vm2761_vm0, %v3259_v15  ;;  %vm2921_vm3 = vmpackc.low %vm624_vm12, %vm620_vm11  ;;  %vm637_vm12 = vcmp.eq.s32.totalorder %v506_v48, %v3658_v30  ;;  %vm634_vm0 = vcmp.eq.s32.totalorder %v506_v48, %v3666_v31 }
  0xb0   : > { %2922 = vmatpush1.bf16.msk.msra.mxu1 %vm2921_vm3, %v3259_v15  ;;  %vm2763_vm6 = vmpackc.low %vm631_vm15, %vm627_vm14  ;;  %vm641_vm14 = vcmp.eq.s32.totalorder %v507_v49, %v3658_v30  ;;  %vm636_vm3 = vcmp.eq.s32.totalorder %v506_v48, %v3674_v32 }
  0xb1   : > { %2764 = vmatprep.subr.msk.bf16.mxu0 %vm2763_vm6, %v3259_v15  ;;  %vm2923_vm9 = vmpackc.low %vm633_vm2, %vm629_vm1  ;;  %vm638_vm1 = vcmp.eq.s32.totalorder %v507_v49, %v3666_v31  ;;  %vm640_vm6 = vcmp.eq.s32.totalorder %v507_v49, %v3674_v32 }
  0xb2   : > { %2924 = vmatprep.subr.msk.bf16.mxu1 %vm2923_vm9, %v3259_v15  ;;  %vm2765_vm11 = vmpackc.low %vm630_vm5, %vm626_vm4  ;;  %vm643_vm5 = vcmp.eq.s32.totalorder %v508_v50, %v3650_v29  ;;  %vm647_vm9 = vcmp.eq.s32.totalorder %v509_v51, %v3650_v29 }
  0xb3   : > { %2766 = vmatpush1.bf16.msk.msra.mxu0 %vm2765_vm11, %v3259_v15  ;;  %vm2925_vm15 = vmpackc.low %vm632_vm8, %vm628_vm7  ;;  %vm645_vm8 = vcmp.eq.s32.totalorder %v508_v50, %v3658_v30  ;;  %vm642_vm11 = vcmp.eq.s32.totalorder %v508_v50, %v3666_v31 }
  0xb4   : > { %2926 = vmatpush1.bf16.msk.msra.mxu1 %vm2925_vm15, %v3259_v15  ;;  %vm2767_vm2 = vmpackc.low %vm639_vm13, %vm635_vm10  ;;  %vm649_vm10 = vcmp.eq.s32.totalorder %v509_v51, %v3658_v30  ;;  %vm644_vm15 = vcmp.eq.s32.totalorder %v508_v50, %v3674_v32 }
  0xb5   : > { %2768 = vmatprep.subr.msk.bf16.mxu0 %vm2767_vm2, %v3259_v15  ;;  %vm2927_vm4 = vmpackc.low %vm641_vm14, %vm637_vm12  ;;  %vm646_vm12 = vcmp.eq.s32.totalorder %v509_v51, %v3666_v31  ;;  %vm648_vm2 = vcmp.eq.s32.totalorder %v509_v51, %v3674_v32 }
  0xb6   : > { %2928 = vmatprep.subr.msk.bf16.mxu1 %vm2927_vm4, %v3259_v15  ;;  %vm2769_vm7 = vmpackc.low %vm638_vm1, %vm634_vm0  ;;  %vm651_vm1 = vcmp.eq.s32.totalorder %v510_v52, %v3650_v29  ;;  %vm655_vm4 = vcmp.eq.s32.totalorder %v511_v53, %v3650_v29 }
  0xb7   : > { %2770 = vmatpush1.bf16.msk.msra.mxu0 %vm2769_vm7, %v3259_v15  ;;  %vm2929_vm13 = vmpackc.low %vm640_vm6, %vm636_vm3  ;;  %vm653_vm6 = vcmp.eq.s32.totalorder %v510_v52, %v3658_v30  ;;  %vm650_vm7 = vcmp.eq.s32.totalorder %v510_v52, %v3666_v31 }
  0xb8   : > { %2930 = vmatpush1.bf16.msk.msra.mxu1 %vm2929_vm13, %v3259_v15  ;;  %vm2771_vm14 = vmpackc.low %vm647_vm9, %vm643_vm5  ;;  %vm657_vm5 = vcmp.eq.s32.totalorder %v511_v53, %v3658_v30  ;;  %vm652_vm13 = vcmp.eq.s32.totalorder %v510_v52, %v3674_v32 }
  0xb9   : > { %2772 = vmatprep.subr.msk.bf16.mxu0 %vm2771_vm14, %v3259_v15  ;;  %vm2931_vm0 = vmpackc.low %vm649_vm10, %vm645_vm8  ;;  %vm654_vm8 = vcmp.eq.s32.totalorder %v511_v53, %v3666_v31  ;;  %vm1061_vm14 = vcmp.eq.s32.totalorder %v3437_v1, %v3977_v55 }
  0xba   : > { %2932 = vmatprep.subr.msk.bf16.mxu1 %vm2931_vm0, %v3259_v15  ;;  %vm2773_vm3 = vmpackc.low %vm646_vm12, %vm642_vm11  ;;  %vm656_vm11 = vcmp.eq.s32.totalorder %v511_v53, %v3674_v32  ;;  %vm1063_vm0 = vcmp.eq.s32.totalorder %v3437_v1, %v3983_v56 }
  0xbb   : > { %2774 = vmatpush1.bf16.msk.msra.mxu0 %vm2773_vm3, %v3259_v15  ;;  %vm2933_vm9 = vmpackc.low %vm648_vm2, %vm644_vm15  ;;  %vm1065_vm15 = vcmp.eq.s32.totalorder %v3452_v6, %v3977_v55  ;;  %vm1060_vm3 = vcmp.eq.s32.totalorder %v3437_v1, %v3989_v57 }
  0xbc   : > { %2934 = vmatpush1.bf16.msk.msra.mxu1 %vm2933_vm9, %v3259_v15  ;;  %vm2775_vm10 = vmpackc.low %vm655_vm4, %vm651_vm1  ;;  %vm1067_vm1 = vcmp.eq.s32.totalorder %v3452_v6, %v3983_v56  ;;  %vm1062_vm9 = vcmp.eq.s32.totalorder %v3437_v1, %v3995_v58 }
  0xbd   : > { %2776 = vmatprep.subr.msk.bf16.mxu0 %vm2775_vm10, %v3259_v15  ;;  %vm2935_vm12 = vmpackc.low %vm657_vm5, %vm653_vm6  ;;  %vm1064_vm6 = vcmp.eq.s32.totalorder %v3452_v6, %v3989_v57  ;;  %vm1069_vm10 = vcmp.eq.s32.totalorder %v3462_v10, %v3977_v55 }
  0xbe   : > { %2936 = vmatprep.subr.msk.bf16.mxu1 %vm2935_vm12, %v3259_v15  ;;  %vm2777_vm2 = vmpackc.low %vm654_vm8, %vm650_vm7  ;;  %vm1066_vm7 = vcmp.eq.s32.totalorder %v3452_v6, %v3995_v58  ;;  %vm1071_vm12 = vcmp.eq.s32.totalorder %v3462_v10, %v3983_v56 }
  0xbf   : > { %2778 = vmatpush1.bf16.msk.msra.mxu0 %vm2777_vm2, %v3259_v15  ;;  %vm2937_vm4 = vmpackc.low %vm656_vm11, %vm652_vm13  ;;  %vm1073_vm13 = vcmp.eq.s32.totalorder %v3465_v11, %v3977_v55  ;;  %vm1068_vm2 = vcmp.eq.s32.totalorder %v3462_v10, %v3989_v57 }
  0xc0   : > { %2938 = vmatpush1.bf16.msk.msra.mxu1 %vm2937_vm4, %v3259_v15  ;;  %vm2779_vm5 = vmpackc.low %vm1065_vm15, %vm1061_vm14  ;;  %vm1075_vm14 = vcmp.eq.s32.totalorder %v3465_v11, %v3983_v56  ;;  %vm1070_vm4 = vcmp.eq.s32.totalorder %v3462_v10, %v3995_v58 }
  0xc1   : > { %2780 = vmatprep.subr.msk.bf16.mxu0 %vm2779_vm5, %v3259_v15  ;;  %vm2939_vm8 = vmpackc.low %vm1067_vm1, %vm1063_vm0  ;;  %vm1072_vm0 = vcmp.eq.s32.totalorder %v3465_v11, %v3989_v57  ;;  %vm1077_vm5 = vcmp.eq.s32.totalorder %v3495_v16, %v3977_v55 }
  0xc2   : > { %2940 = vmatprep.subr.msk.bf16.mxu1 %vm2939_vm8, %v3259_v15  ;;  %vm2781_vm11 = vmpackc.low %vm1064_vm6, %vm1060_vm3  ;;  %vm1074_vm3 = vcmp.eq.s32.totalorder %v3465_v11, %v3995_v58  ;;  %vm1079_vm8 = vcmp.eq.s32.totalorder %v3495_v16, %v3983_v56 }
  0xc3   : > { %2782 = vmatpush1.bf16.msk.msra.mxu0 %vm2781_vm11, %v3259_v15  ;;  %vm2941_vm15 = vmpackc.low %vm1066_vm7, %vm1062_vm9  ;;  %vm1081_vm9 = vcmp.eq.s32.totalorder %v3498_v17, %v3977_v55  ;;  %vm1076_vm11 = vcmp.eq.s32.totalorder %v3495_v16, %v3989_v57 }
  0xc4   : > { %2942 = vmatpush1.bf16.msk.msra.mxu1 %vm2941_vm15, %v3259_v15  ;;  %vm2783_vm1 = vmpackc.low %vm1073_vm13, %vm1069_vm10  ;;  %vm1083_vm10 = vcmp.eq.s32.totalorder %v3498_v17, %v3983_v56  ;;  %vm1078_vm15 = vcmp.eq.s32.totalorder %v3495_v16, %v3995_v58 }
  0xc5   : > { %2784 = vmatprep.subr.msk.bf16.mxu0 %vm2783_vm1, %v3259_v15  ;;  %vm2943_vm6 = vmpackc.low %vm1075_vm14, %vm1071_vm12  ;;  %vm1080_vm12 = vcmp.eq.s32.totalorder %v3498_v17, %v3989_v57  ;;  %vm1085_vm1 = vcmp.eq.s32.totalorder %v3524_v18, %v3977_v55 }
  0xc6   : > { %2944 = vmatprep.subr.msk.bf16.mxu1 %vm2943_vm6, %v3259_v15  ;;  %vm2785_vm7 = vmpackc.low %vm1072_vm0, %vm1068_vm2  ;;  %vm1082_vm2 = vcmp.eq.s32.totalorder %v3498_v17, %v3995_v58  ;;  %vm1087_vm6 = vcmp.eq.s32.totalorder %v3524_v18, %v3983_v56 }
  0xc7   : > { %2786 = vmatpush1.bf16.msk.msra.mxu0 %vm2785_vm7, %v3259_v15  ;;  %vm2945_vm13 = vmpackc.low %vm1074_vm3, %vm1070_vm4  ;;  %vm1089_vm4 = vcmp.eq.s32.totalorder %v3527_v19, %v3977_v55  ;;  %vm1084_vm7 = vcmp.eq.s32.totalorder %v3524_v18, %v3989_v57 }
  0xc8   : > { %2946 = vmatpush1.bf16.msk.msra.mxu1 %vm2945_vm13, %v3259_v15  ;;  %vm2787_vm14 = vmpackc.low %vm1081_vm9, %vm1077_vm5  ;;  %vm1091_vm5 = vcmp.eq.s32.totalorder %v3527_v19, %v3983_v56  ;;  %vm1086_vm13 = vcmp.eq.s32.totalorder %v3524_v18, %v3995_v58 }
  0xc9   : > { %2788 = vmatprep.subr.msk.bf16.mxu0 %vm2787_vm14, %v3259_v15  ;;  %vm2947_vm0 = vmpackc.low %vm1083_vm10, %vm1079_vm8  ;;  %vm1088_vm8 = vcmp.eq.s32.totalorder %v3527_v19, %v3989_v57  ;;  %vm1093_vm14 = vcmp.eq.s32.totalorder %v3550_v20, %v3977_v55 }
  0xca   : > { %2948 = vmatprep.subr.msk.bf16.mxu1 %vm2947_vm0, %v3259_v15  ;;  %vm2789_vm3 = vmpackc.low %vm1080_vm12, %vm1076_vm11  ;;  %vm1090_vm11 = vcmp.eq.s32.totalorder %v3527_v19, %v3995_v58  ;;  %vm1095_vm0 = vcmp.eq.s32.totalorder %v3550_v20, %v3983_v56 }
  0xcb   : > { %2790 = vmatpush1.bf16.msk.msra.mxu0 %vm2789_vm3, %v3259_v15  ;;  %vm2949_vm9 = vmpackc.low %vm1082_vm2, %vm1078_vm15  ;;  %vm1097_vm15 = vcmp.eq.s32.totalorder %v3553_v21, %v3977_v55  ;;  %vm1092_vm3 = vcmp.eq.s32.totalorder %v3550_v20, %v3989_v57 }
  0xcc   : > { %2950 = vmatpush1.bf16.msk.msra.mxu1 %vm2949_vm9, %v3259_v15  ;;  %vm2791_vm10 = vmpackc.low %vm1089_vm4, %vm1085_vm1  ;;  %vm1099_vm1 = vcmp.eq.s32.totalorder %v3553_v21, %v3983_v56  ;;  %vm1094_vm9 = vcmp.eq.s32.totalorder %v3550_v20, %v3995_v58 }
  0xcd   : > { %2792 = vmatprep.subr.msk.bf16.mxu0 %vm2791_vm10, %v3259_v15  ;;  %vm2951_vm12 = vmpackc.low %vm1091_vm5, %vm1087_vm6  ;;  %vm1096_vm6 = vcmp.eq.s32.totalorder %v3553_v21, %v3989_v57  ;;  %vm1101_vm10 = vcmp.eq.s32.totalorder %v3576_v22, %v3977_v55 }
  0xce   : > { %2952 = vmatprep.subr.msk.bf16.mxu1 %vm2951_vm12, %v3259_v15  ;;  %vm2793_vm2 = vmpackc.low %vm1088_vm8, %vm1084_vm7  ;;  %vm1098_vm7 = vcmp.eq.s32.totalorder %v3553_v21, %v3995_v58  ;;  %vm1103_vm12 = vcmp.eq.s32.totalorder %v3576_v22, %v3983_v56 }
  0xcf   : > { %2794 = vmatpush1.bf16.msk.msra.mxu0 %vm2793_vm2, %v3259_v15  ;;  %vm2953_vm4 = vmpackc.low %vm1090_vm11, %vm1086_vm13  ;;  %vm1105_vm13 = vcmp.eq.s32.totalorder %v3579_v23, %v3977_v55  ;;  %vm1100_vm2 = vcmp.eq.s32.totalorder %v3576_v22, %v3989_v57 }
  0xd0   : > { %2954 = vmatpush1.bf16.msk.msra.mxu1 %vm2953_vm4, %v3259_v15  ;;  %vm2795_vm5 = vmpackc.low %vm1097_vm15, %vm1093_vm14  ;;  %vm1107_vm14 = vcmp.eq.s32.totalorder %v3579_v23, %v3983_v56  ;;  %vm1102_vm4 = vcmp.eq.s32.totalorder %v3576_v22, %v3995_v58 }
  0xd1   : > { %2796 = vmatprep.subr.msk.bf16.mxu0 %vm2795_vm5, %v3259_v15  ;;  %vm2955_vm8 = vmpackc.low %vm1099_vm1, %vm1095_vm0  ;;  %vm1104_vm0 = vcmp.eq.s32.totalorder %v3579_v23, %v3989_v57  ;;  %vm1109_vm5 = vcmp.eq.s32.totalorder %v3602_v24, %v3977_v55 }
  0xd2   : > { %2956 = vmatprep.subr.msk.bf16.mxu1 %vm2955_vm8, %v3259_v15  ;;  %vm2797_vm11 = vmpackc.low %vm1096_vm6, %vm1092_vm3  ;;  %vm1106_vm3 = vcmp.eq.s32.totalorder %v3579_v23, %v3995_v58  ;;  %vm1111_vm8 = vcmp.eq.s32.totalorder %v3602_v24, %v3983_v56 }
  0xd3   : > { %2798 = vmatpush1.bf16.msk.msra.mxu0 %vm2797_vm11, %v3259_v15  ;;  %vm2957_vm15 = vmpackc.low %vm1098_vm7, %vm1094_vm9  ;;  %vm1113_vm9 = vcmp.eq.s32.totalorder %v3605_v25, %v3977_v55  ;;  %vm1108_vm11 = vcmp.eq.s32.totalorder %v3602_v24, %v3989_v57 }
  0xd4   : > { %2958 = vmatpush1.bf16.msk.msra.mxu1 %vm2957_vm15, %v3259_v15  ;;  %vm2799_vm1 = vmpackc.low %vm1105_vm13, %vm1101_vm10  ;;  %vm1115_vm10 = vcmp.eq.s32.totalorder %v3605_v25, %v3983_v56  ;;  %vm1110_vm15 = vcmp.eq.s32.totalorder %v3602_v24, %v3995_v58 }
  0xd5   : > { %2800 = vmatprep.subr.msk.bf16.mxu0 %vm2799_vm1, %v3259_v15  ;;  %vm2959_vm6 = vmpackc.low %vm1107_vm14, %vm1103_vm12  ;;  %vm1112_vm12 = vcmp.eq.s32.totalorder %v3605_v25, %v3989_v57  ;;  %vm1117_vm1 = vcmp.eq.s32.totalorder %v3628_v26, %v3977_v55 }
  0xd6   : > { %2960 = vmatprep.subr.msk.bf16.mxu1 %vm2959_vm6, %v3259_v15  ;;  %vm2801_vm7 = vmpackc.low %vm1104_vm0, %vm1100_vm2  ;;  %vm1114_vm2 = vcmp.eq.s32.totalorder %v3605_v25, %v3995_v58  ;;  %vm1119_vm6 = vcmp.eq.s32.totalorder %v3628_v26, %v3983_v56 }
  0xd7   : > { %2802 = vmatpush1.bf16.msk.msra.mxu0 %vm2801_vm7, %v3259_v15  ;;  %vm2961_vm13 = vmpackc.low %vm1106_vm3, %vm1102_vm4  ;;  %vm1121_vm4 = vcmp.eq.s32.totalorder %v3631_v27, %v3977_v55  ;;  %vm1116_vm7 = vcmp.eq.s32.totalorder %v3628_v26, %v3989_v57 }
  0xd8   : > { %2962 = vmatpush1.bf16.msk.msra.mxu1 %vm2961_vm13, %v3259_v15  ;;  %vm2803_vm14 = vmpackc.low %vm1113_vm9, %vm1109_vm5  ;;  %vm1123_vm5 = vcmp.eq.s32.totalorder %v3631_v27, %v3983_v56  ;;  %vm1118_vm13 = vcmp.eq.s32.totalorder %v3628_v26, %v3995_v58 }
  0xd9   : > { %2804 = vmatprep.subr.msk.bf16.mxu0 %vm2803_vm14, %v3259_v15  ;;  %vm2963_vm0 = vmpackc.low %vm1115_vm10, %vm1111_vm8  ;;  %vm1120_vm8 = vcmp.eq.s32.totalorder %v3631_v27, %v3989_v57  ;;  %vm1335_vm14 = vcmp.eq.s32.totalorder %v3437_v1, %v4144_v60 }
  0xda   : > { %2964 = vmatprep.subr.msk.bf16.mxu1 %vm2963_vm0, %v3259_v15  ;;  %vm2805_vm3 = vmpackc.low %vm1112_vm12, %vm1108_vm11  ;;  %vm1122_vm11 = vcmp.eq.s32.totalorder %v3631_v27, %v3995_v58  ;;  %vm1337_vm0 = vcmp.eq.s32.totalorder %v3437_v1, %v4152_v61 }
  0xdb   : > { %2806 = vmatpush1.bf16.msk.msra.mxu0 %vm2805_vm3, %v3259_v15  ;;  %vm2965_vm9 = vmpackc.low %vm1114_vm2, %vm1110_vm15  ;;  %vm1339_vm15 = vcmp.eq.s32.totalorder %v3452_v6, %v4144_v60  ;;  %vm1334_vm3 = vcmp.eq.s32.totalorder %v3437_v1, %v4160_v62 }
  0xdc   : > { %2966 = vmatpush1.bf16.msk.msra.mxu1 %vm2965_vm9, %v3259_v15  ;;  %vm2807_vm10 = vmpackc.low %vm1121_vm4, %vm1117_vm1  ;;  %vm1341_vm1 = vcmp.eq.s32.totalorder %v3452_v6, %v4152_v61  ;;  %vm1336_vm9 = vcmp.eq.s32.totalorder %v3437_v1, %v4168_v63 }
  0xdd   : > { %2808 = vmatprep.subr.msk.bf16.mxu0 %vm2807_vm10, %v3259_v15  ;;  %vm2967_vm12 = vmpackc.low %vm1123_vm5, %vm1119_vm6  ;;  %vm1338_vm6 = vcmp.eq.s32.totalorder %v3452_v6, %v4160_v62  ;;  %vm1343_vm10 = vcmp.eq.s32.totalorder %v3462_v10, %v4144_v60 }
  0xde   : > { %2968 = vmatprep.subr.msk.bf16.mxu1 %vm2967_vm12, %v3259_v15  ;;  %vm2809_vm2 = vmpackc.low %vm1120_vm8, %vm1116_vm7  ;;  %vm1340_vm7 = vcmp.eq.s32.totalorder %v3452_v6, %v4168_v63  ;;  %vm1345_vm12 = vcmp.eq.s32.totalorder %v3462_v10, %v4152_v61  ;;  %v3260_v6 = vmov 0  }
  0xdf   : > { %2810 = vmatpush1.bf16.msk.msra.mxu0 %vm2809_vm2, %v3259_v15  ;;  %vm2969_vm4 = vmpackc.low %vm1122_vm11, %vm1118_vm13  ;;  %vm1347_vm13 = vcmp.eq.s32.totalorder %v3465_v11, %v4144_v60  ;;  %vm1342_vm2 = vcmp.eq.s32.totalorder %v3462_v10, %v4160_v62 }
  0xe0   : > { %2970 = vmatpush1.bf16.msk.msra.mxu1 %vm2969_vm4, %v3259_v15  ;;  %vm2811_vm5 = vmpackc.low %vm1339_vm15, %vm1335_vm14  ;;  %vm1349_vm14 = vcmp.eq.s32.totalorder %v3465_v11, %v4152_v61  ;;  %vm1344_vm4 = vcmp.eq.s32.totalorder %v3462_v10, %v4168_v63 }
  0xe1   : > { %2812 = vmatprep.subr.msk.bf16.mxu0 %vm2811_vm5, %v3259_v15  ;;  %vm2971_vm8 = vmpackc.low %vm1341_vm1, %vm1337_vm0  ;;  %vm1346_vm0 = vcmp.eq.s32.totalorder %v3465_v11, %v4160_v62  ;;  %vm1351_vm5 = vcmp.eq.s32.totalorder %v3495_v16, %v4144_v60 }
  0xe2   : > { %2972 = vmatprep.subr.msk.bf16.mxu1 %vm2971_vm8, %v3259_v15  ;;  %1887 = vmatmul.mubr.bf16.vlgmr.msra.gmra.mrb[0].mxu0 %v3102_v3  ;;  %vm2813_vm11 = vmpackc.low %vm1338_vm6, %vm1334_vm3  ;;  %vm1348_vm3 = vcmp.eq.s32.totalorder %v3465_v11, %v4168_v63  ;;  %vm1353_vm8 = vcmp.eq.s32.totalorder %v3495_v16, %v4152_v61 }
  0xe3   : > { %2814 = vmatpush1.bf16.msk.msra.mxu0 %vm2813_vm11, %v3259_v15  ;;  %2040 = vmatmul.mubr.bf16.vlgmr.msra.gmra.mrb[0].mxu1 %v3102_v3  ;;  %vm2973_vm15 = vmpackc.low %vm1340_vm7, %vm1336_vm9  ;;  %vm1355_vm9 = vcmp.eq.s32.totalorder %v3498_v17, %v4144_v60  ;;  %vm1350_vm11 = vcmp.eq.s32.totalorder %v3495_v16, %v4160_v62 }
  0xe4   : > { %2974 = vmatpush1.bf16.msk.msra.mxu1 %vm2973_vm15, %v3259_v15  ;;  %vm2815_vm1 = vmpackc.low %vm1347_vm13, %vm1343_vm10  ;;  %1896 = vmatprep.mubr.bf16.mxu0 %v2670_v4  ;;  %vm1357_vm10 = vcmp.eq.s32.totalorder %v3498_v17, %v4152_v61  ;;  %vm1352_vm15 = vcmp.eq.s32.totalorder %v3495_v16, %v4168_v63 }
  0xe5   : > { %2816 = vmatprep.subr.msk.bf16.mxu0 %vm2815_vm1, %v3259_v15  ;;  %vm2975_vm6 = vmpackc.low %vm1349_vm14, %vm1345_vm12  ;;  %2049 = vmatprep.mubr.bf16.mxu1 %v2670_v4  ;;  %vm1354_vm12 = vcmp.eq.s32.totalorder %v3498_v17, %v4160_v62  ;;  %vm1359_vm1 = vcmp.eq.s32.totalorder %v3524_v18, %v4144_v60 }
  0xe6   : > { %2976 = vmatprep.subr.msk.bf16.mxu1 %vm2975_vm6, %v3259_v15  ;;  %vm2817_vm7 = vmpackc.low %vm1346_vm0, %vm1342_vm2  ;;  %vm1356_vm2 = vcmp.eq.s32.totalorder %v3498_v17, %v4168_v63  ;;  %vm1361_vm6 = vcmp.eq.s32.totalorder %v3524_v18, %v4152_v61 }
  0xe7   : > { %2818 = vmatpush1.bf16.msk.msra.mxu0 %vm2817_vm7, %v3259_v15  ;;  %vm2977_vm13 = vmpackc.low %vm1348_vm3, %vm1344_vm4  ;;  %vm1363_vm4 = vcmp.eq.s32.totalorder %v3527_v19, %v4144_v60  ;;  %vm1358_vm7 = vcmp.eq.s32.totalorder %v3524_v18, %v4160_v62 }
  0xe8   : > { %2978 = vmatpush1.bf16.msk.msra.mxu1 %vm2977_vm13, %v3259_v15  ;;  %vm2819_vm14 = vmpackc.low %vm1355_vm9, %vm1351_vm5  ;;  %vm1365_vm5 = vcmp.eq.s32.totalorder %v3527_v19, %v4152_v61  ;;  %vm1360_vm13 = vcmp.eq.s32.totalorder %v3524_v18, %v4168_v63 }
  0xe9   : > { %2820 = vmatprep.subr.msk.bf16.mxu0 %vm2819_vm14, %v3259_v15  ;;  %vm2979_vm0 = vmpackc.low %vm1357_vm10, %vm1353_vm8  ;;  %vm1362_vm8 = vcmp.eq.s32.totalorder %v3527_v19, %v4160_v62  ;;  %vm1367_vm14 = vcmp.eq.s32.totalorder %v3550_v20, %v4144_v60 }
  0xea   : > { %2980 = vmatprep.subr.msk.bf16.mxu1 %vm2979_vm0, %v3259_v15  ;;  %vm2821_vm3 = vmpackc.low %vm1354_vm12, %vm1350_vm11  ;;  %1897 = vmatmul.mubr.bf16.gmra.mrb[4].mxu0 %v2669_v5  ;;  %vm1364_vm11 = vcmp.eq.s32.totalorder %v3527_v19, %v4168_v63  ;;  %vm1369_vm0 = vcmp.eq.s32.totalorder %v3550_v20, %v4152_v61 }
  0xeb   : > { %2822 = vmatpush1.bf16.msk.msra.mxu0 %vm2821_vm3, %v3259_v15  ;;  %vm2981_vm9 = vmpackc.low %vm1356_vm2, %vm1352_vm15  ;;  %2050 = vmatmul.mubr.bf16.gmra.mrb[4].mxu1 %v2669_v5  ;;  %vm1371_vm15 = vcmp.eq.s32.totalorder %v3553_v21, %v4144_v60  ;;  %vm1366_vm3 = vcmp.eq.s32.totalorder %v3550_v20, %v4160_v62 }
  0xec   : > { %2982 = vmatpush1.bf16.msk.msra.mxu1 %vm2981_vm9, %v3259_v15  ;;  %vm2823_vm10 = vmpackc.low %vm1363_vm4, %vm1359_vm1  ;;  %1937 = vmatprep.mubr.bf16.mxu0 %v3260_v6  ;;  %vm1373_vm1 = vcmp.eq.s32.totalorder %v3553_v21, %v4152_v61  ;;  %vm1368_vm9 = vcmp.eq.s32.totalorder %v3550_v20, %v4168_v63 }
  0xed   : > { %2824 = vmatprep.subr.msk.bf16.mxu0 %vm2823_vm10, %v3259_v15  ;;  %vm2983_vm12 = vmpackc.low %vm1365_vm5, %vm1361_vm6  ;;  %2090 = vmatprep.mubr.bf16.mxu1 %v3260_v6  ;;  %vm1370_vm6 = vcmp.eq.s32.totalorder %v3553_v21, %v4160_v62  ;;  %vm1375_vm10 = vcmp.eq.s32.totalorder %v3576_v22, %v4144_v60 }
  0xee   : > { %2984 = vmatprep.subr.msk.bf16.mxu1 %vm2983_vm12, %v3259_v15  ;;  %vm2825_vm2 = vmpackc.low %vm1362_vm8, %vm1358_vm7  ;;  %vm1372_vm7 = vcmp.eq.s32.totalorder %v3553_v21, %v4168_v63  ;;  %vm1377_vm12 = vcmp.eq.s32.totalorder %v3576_v22, %v4152_v61 }
  0xef   : > { %2826 = vmatpush1.bf16.msk.msra.mxu0 %vm2825_vm2, %v3259_v15  ;;  %vm2985_vm4 = vmpackc.low %vm1364_vm11, %vm1360_vm13  ;;  %vm1379_vm13 = vcmp.eq.s32.totalorder %v3579_v23, %v4144_v60  ;;  %vm1374_vm2 = vcmp.eq.s32.totalorder %v3576_v22, %v4160_v62 }
  0xf0   : > { %2986 = vmatpush1.bf16.msk.msra.mxu1 %vm2985_vm4, %v3259_v15  ;;  %vm2827_vm5 = vmpackc.low %vm1371_vm15, %vm1367_vm14  ;;  %vm1381_vm14 = vcmp.eq.s32.totalorder %v3579_v23, %v4152_v61  ;;  %vm1376_vm4 = vcmp.eq.s32.totalorder %v3576_v22, %v4168_v63 }
  0xf1   : > { %2828 = vmatprep.subr.msk.bf16.mxu0 %vm2827_vm5, %v3259_v15  ;;  %vm2987_vm8 = vmpackc.low %vm1373_vm1, %vm1369_vm0  ;;  %vm1378_vm0 = vcmp.eq.s32.totalorder %v3579_v23, %v4160_v62  ;;  %vm1383_vm5 = vcmp.eq.s32.totalorder %v3602_v24, %v4144_v60 }
  0xf2   : > { %2988 = vmatprep.subr.msk.bf16.mxu1 %vm2987_vm8, %v3259_v15  ;;  %vm2829_vm11 = vmpackc.low %vm1370_vm6, %vm1366_vm3  ;;  %vm1380_vm3 = vcmp.eq.s32.totalorder %v3579_v23, %v4168_v63  ;;  %vm1385_vm8 = vcmp.eq.s32.totalorder %v3602_v24, %v4152_v61 }
  0xf3   : > { %2830 = vmatpush1.bf16.msk.msra.mxu0 %vm2829_vm11, %v3259_v15  ;;  %vm2989_vm15 = vmpackc.low %vm1372_vm7, %vm1368_vm9  ;;  %vm1387_vm9 = vcmp.eq.s32.totalorder %v3605_v25, %v4144_v60  ;;  %vm1382_vm11 = vcmp.eq.s32.totalorder %v3602_v24, %v4160_v62 }
  0xf4   : > { %2990 = vmatpush1.bf16.msk.msra.mxu1 %vm2989_vm15, %v3259_v15  ;;  %vm2831_vm1 = vmpackc.low %vm1379_vm13, %vm1375_vm10  ;;  %vm1389_vm10 = vcmp.eq.s32.totalorder %v3605_v25, %v4152_v61  ;;  %vm1384_vm15 = vcmp.eq.s32.totalorder %v3602_v24, %v4168_v63 }
  0xf5   : > { %2832 = vmatprep.subr.msk.bf16.mxu0 %vm2831_vm1, %v3259_v15  ;;  %vm2991_vm6 = vmpackc.low %vm1381_vm14, %vm1377_vm12  ;;  %vm1386_vm12 = vcmp.eq.s32.totalorder %v3605_v25, %v4160_v62  ;;  %vm1391_vm1 = vcmp.eq.s32.totalorder %v3628_v26, %v4144_v60 }
  0xf6   : > { %2992 = vmatprep.subr.msk.bf16.mxu1 %vm2991_vm6, %v3259_v15  ;;  %vm2833_vm7 = vmpackc.low %vm1378_vm0, %vm1374_vm2  ;;  %vm1388_vm2 = vcmp.eq.s32.totalorder %v3605_v25, %v4168_v63  ;;  %vm1393_vm6 = vcmp.eq.s32.totalorder %v3628_v26, %v4152_v61 }
  0xf7   : > { %2834 = vmatpush1.bf16.msk.msra.mxu0 %vm2833_vm7, %v3259_v15  ;;  %vm2993_vm13 = vmpackc.low %vm1380_vm3, %vm1376_vm4  ;;  %vm1395_vm4 = vcmp.eq.s32.totalorder %v3631_v27, %v4144_v60  ;;  %vm1390_vm7 = vcmp.eq.s32.totalorder %v3628_v26, %v4160_v62 }
  0xf8   : > { %2994 = vmatpush1.bf16.msk.msra.mxu1 %vm2993_vm13, %v3259_v15  ;;  %vm2835_vm14 = vmpackc.low %vm1387_vm9, %vm1383_vm5  ;;  %vm1397_vm5 = vcmp.eq.s32.totalorder %v3631_v27, %v4152_v61  ;;  %vm1392_vm13 = vcmp.eq.s32.totalorder %v3628_v26, %v4168_v63 }
  0xf9   : > { %2836 = vmatprep.subr.msk.bf16.mxu0 %vm2835_vm14, %v3259_v15  ;;  %vm2995_vm0 = vmpackc.low %vm1389_vm10, %vm1385_vm8  ;;  %vm1394_vm8 = vcmp.eq.s32.totalorder %v3631_v27, %v4160_v62  ;;  %v2110_v62 = vstv %s2109_s19 }
  0xfa   : > { %2996 = vmatprep.subr.msk.bf16.mxu1 %vm2995_vm0, %v3259_v15  ;;  %vm2837_vm3 = vmpackc.low %vm1386_vm12, %vm1382_vm11  ;;  %vm1396_vm11 = vcmp.eq.s32.totalorder %v3631_v27, %v4168_v63 }
  0xfb   : > { %2838 = vmatpush1.bf16.msk.msra.mxu0 %vm2837_vm3, %v3259_v15  ;;  %vm2997_vm9 = vmpackc.low %vm1388_vm2, %vm1384_vm15  ;;  %vm2230_vm2 = vcmp.lt.s32.totalorder %v206_v0, 512 }
  0xfc   : > { %2998 = vmatpush1.bf16.msk.msra.mxu1 %vm2997_vm9, %v3259_v15  ;;  %vm2839_vm10 = vmpackc.low %vm1395_vm4, %vm1391_vm1 }
  0xfd   : > { %2840 = vmatprep.subr.msk.bf16.mxu0 %vm2839_vm10, %v3259_v15  ;;  %vm2999_vm12 = vmpackc.low %vm1397_vm5, %vm1393_vm6 }
  0xfe   : > { %3000 = vmatprep.subr.msk.bf16.mxu1 %vm2999_vm12, %v3259_v15  ;;  %vm2841_vm14 = vmpackc.low %vm1394_vm8, %vm1390_vm7 }
  0xff   : > { %2842 = vmatpush1.bf16.msk.msra.mxu0 %vm2841_vm14, %v3259_v15  ;;  %vm3001_vm15 = vmpackc.low %vm1396_vm11, %vm1392_vm13 }
 0x100   : > { %3002 = vmatpush1.bf16.msk.msra.mxu1 %vm3001_vm15, %v3259_v15 }
 0x102   : > { %1938 = vmatmul.mubr.bf16.vlgmr.msra.gmra.mrb[0].mxu0 %v3107_v7 }
 0x103   : > { %2091 = vmatmul.mubr.bf16.vlgmr.msra.gmra.mrb[0].mxu1 %v3107_v7  ;;  %1947 = vmatprep.mubr.bf16.mxu0 %v3260_v6 }
 0x104   : > { %2100 = vmatprep.mubr.bf16.mxu1 %v3260_v6 }
 0x10a   : > { %1948 = vmatmul.mubr.bf16.gmra.mrb[4].mxu0 %v3108_v8 }
 0x10b   : > { %2101 = vmatmul.mubr.bf16.gmra.mrb[4].mxu1 %v3108_v8 }
 0x1d5   : > { %v1939_v9 = vpop.f32.mrb[0].mxu0 }
 0x1d6   : > { %v2092_v10 = vpop.f32.mrb[0].mxu1  ;;  %v1941_v11 = vpop.f32.mrb[1].mxu0  ;;  %v2115_v14 = vmul.f32 %v1939_v9, %v1939_v9 }
 0x1d7   : > { %v2094_v12 = vpop.f32.mrb[1].mxu1  ;;  %v1943_v13 = vpop.f32.mrb[2].mxu0  ;;  %v2117_v19 = vmul.f32 %v2092_v10, %v2092_v10  ;;  %v2116_v15 = vmul.f32 %v1941_v11, %v1941_v11 }
 0x1d8   : > { %v2119_v16 = vmul.f32 %v1943_v13, %v1943_v13  ;;  %v2096_v17 = vpop.f32.mrb[2].mxu1  ;;  %v1945_v18 = vpop.f32.mrb[3].mxu0  ;;  %v2118_v23 = vmul.f32 %v2094_v12, %v2094_v12 }
 0x1d9   : > { %v2121_v20 = vmul.f32 %v2096_v17, %v2096_v17  ;;  %v2120_v21 = vmul.f32 %v1945_v18, %v1945_v18  ;;  %v2098_v22 = vpop.f32.mrb[3].mxu1 }
 0x1da   : > { %v2123_v24 = vadd.f32 %v2119_v16, %v2115_v14  ;;  %v2122_v25 = vmul.f32 %v2098_v22, %v2098_v22 }
 0x1db   : > { %v2137_v26 = vadd.f32 %v2121_v20, %v2117_v19  ;;  %v2130_v27 = vadd.f32 %v2120_v21, %v2116_v15 }
 0x1dc   : > { %v2124_v28 = vrot.slane %v2123_v24, 4  ;;  %v2144_v29 = vadd.f32 %v2122_v25, %v2118_v23 }
 0x1dd   : > { %v2138_v30 = vrot.slane %v2137_v26, 4  ;;  %v2131_v31 = vrot.slane %v2130_v27, 4  ;;  %v1949_v32 = vpop.f32.mrb[4].mxu0 }
 0x1de   : > { %v2125_v33 = vadd.f32 %v2124_v28, %v2123_v24  ;;  %v2145_v34 = vrot.slane %v2144_v29, 4  ;;  %v2102_v35 = vpop.f32.mrb[4].mxu1  ;;  %v1951_v36 = vpop.f32.mrb[5].mxu0  ;;  %v2111_v7 = vadd.f32 %v2110_v62, %v1949_v32 }
 0x1df   : > { %v2139_v37 = vadd.f32 %v2138_v30, %v2137_v26  ;;  %v2132_v38 = vadd.f32 %v2131_v31, %v2130_v27  ;;  %v2104_v39 = vpop.f32.mrb[5].mxu1  ;;  %v1953_v40 = vpop.f32.mrb[6].mxu0  ;;  %v2113_v10 = vadd.f32 %v2110_v62, %v2102_v35  ;;  %v2112_v12 = vadd.f32 %v2110_v62, %v1951_v36 }
 0x1e0   : > { %v2126_v41 = vrot.slane %v2125_v33, 2  ;;  %v2146_v42 = vadd.f32 %v2145_v34, %v2144_v29  ;;  %v2106_v43 = vpop.f32.mrb[6].mxu1  ;;  %v1954_v44 = vpop.f32.mrb[7].mxu0  ;;  %v2114_v16 = vadd.f32 %v2110_v62, %v2104_v39 }
 0x1e1   : > { %v2140_v45 = vrot.slane %v2139_v37, 2  ;;  %v2133_v46 = vrot.slane %v2132_v38, 2  ;;  %v2107_v47 = vpop.f32.mrb[7].mxu1 }
 0x1e2   : > { %v2147_v48 = vrot.slane %v2146_v42, 2  ;;  %v2127_v49 = vadd.f32 %v2126_v41, %v2125_v33 }
 0x1e3   : > { %v2141_v50 = vadd.f32 %v2140_v45, %v2139_v37  ;;  %v2134_v51 = vadd.f32 %v2133_v46, %v2132_v38 }
 0x1e4   : > { %v2128_v52 = vrot.slane %v2127_v49, 1  ;;  %v2148_v53 = vadd.f32 %v2147_v48, %v2146_v42 }
 0x1e5   : > { %v2142_v54 = vrot.slane %v2141_v50, 1  ;;  %v2135_v55 = vrot.slane %v2134_v51, 1 }
 0x1e6   : > { %v2129_v56 = vadd.f32 %v2128_v52, %v2127_v49  ;;  %v2149_v57 = vrot.slane %v2148_v53, 1 }
 0x1e7   : > { %v2143_v58 = vadd.f32 %v2142_v54, %v2141_v50  ;;  %v2136_v59 = vadd.f32 %v2135_v55, %v2134_v51 }
 0x1e8   : > { %v2151_v60 = vsub.f32 %v2129_v56, %v1949_v32  ;;  %v2150_v61 = vadd.f32 %v2149_v57, %v2148_v53  ;;  %v3261_v32 = vmov 1966171168  }
 0x1e9   : > { %v2153_v63 = vsub.f32 %v2143_v58, %v2102_v35  ;;  %v2152_v2 = vsub.f32 %v2136_v59, %v1951_v36  ;;  %v2206_v33 = vunpack.c.l.s4 %v3261_v32 }
 0x1ea   : > { %v2155_v3 = vmul.f32 0.5, %v2151_v60  ;;  %v2154_v4 = vsub.f32 %v2150_v61, %v2104_v39 }
 0x1eb   : > { %v2157_v5 = vmul.f32 0.5, %v2153_v63  ;;  %v2156_v6 = vmul.f32 0.5, %v2152_v2  ;;  %v2207_v34 = vunpack.c.0.s8 %v2206_v33 }
 0x1ec   : > { %v2163_v8 = vrot.slane %v2155_v3, 1  ;;  %v2158_v9 = vmul.f32 0.5, %v2154_v4 }
 0x1ed   : > { %v2165_v11 = vrot.slane %v2157_v5, 1  ;;  %v2164_v13 = vrot.slane %v2156_v6, 1  ;;  %v2210_v37 = vsub.s32 %v2207_v34, %v3437_v1 }
 0x1ee   : > { %v2171_v14 = vadd.f32 %v2163_v8, %v2111_v7  ;;  %v2166_v17 = vrot.slane %v2158_v9, 1 }
 0x1ef   : > { %v2173_v18 = vadd.f32 %v2165_v11, %v2113_v10  ;;  %v2172_v19 = vadd.f32 %v2164_v13, %v2112_v12 }
 0x1f0   : > { %v2672_v15 = vmul.f32 -1.442695, %v2171_v14  ;;  %v2174_v20 = vadd.f32 %v2166_v17, %v2114_v16 }
 0x1f1   : > { %v2674_v21 = vmul.f32 -1.442695, %v2173_v18  ;;  %v2673_v22 = vmul.f32 -1.442695, %v2172_v19 }
 0x1f2   : > { %3109 = vpow2.f32 %v2672_v15  ;;  %v2675_v23 = vmul.f32 -1.442695, %v2174_v20 }
 0x1f3   : > { %3111 = vpow2.f32 %v2674_v21 }
 0x1f4   : > { %3113 = vpow2.f32 %v2673_v22 }
 0x1f5   : > { %3115 = vpow2.f32 %v2675_v23 }
 0x1fc   : > { %v3110_v24 = vpop.eup %3109 }
 0x1fd   : > { %v3112_v25 = vpop.eup %3111  ;;  %v2187_v26 = vadd.f32 1.0, %v3110_v24 }
 0x1fe   : > { %v3114_v27 = vpop.eup %3113  ;;  %v2189_v28 = vadd.f32 1.0, %v3112_v25 }
 0x1ff   : > { %v3116_v29 = vpop.eup %3115  ;;  %3117 = vrcp.f32 %v2187_v26  ;;  %v2188_v30 = vadd.f32 1.0, %v3114_v27 }
 0x200   : > { %3119 = vrcp.f32 %v2189_v28  ;;  %v2190_v31 = vadd.f32 1.0, %v3116_v29 }
 0x201   : > { %3121 = vrcp.f32 %v2188_v30 }
 0x202   : > { %3123 = vrcp.f32 %v2190_v31 }
 0x209   : > { %v3118_v35 = vpop.eup %3117 }
 0x20a   : > { %v3120_v36 = vpop.eup %3119 }
 0x20b   : > { %v3122_v38 = vpop.eup %3121 }
 0x20c   : > { %v3124_v39 = vpop.eup %3123  ;;  %v2203_v40 = vcombine.low %v3118_v35, %v3122_v38 }
 0x20d   : > { %v2204_v41 = vcombine.low %v3120_v36, %v3124_v39 }
 0x20e   : > { %v2211_v42 = vrot.slane %v2203_v40, %v2210_v37 }
 0x20f   : > { %v2218_v43 = vrot.slane %v2204_v41, %v2210_v37 }
 0x211   : > { %v2219_v44 = vcombine.low %v2211_v42, %v2218_v43 }
 0x213   : > { %v2226_v45 = vrot.slane %v2219_v44, %v2210_v37 }
 0x215   : > { %2232 = vst.msk [vmem:[%s202_s26] sm:$0xf] %vm2230_vm2, %v2226_v45 }
 0x216   : > { %3196 = shalt.err (!%p3193_p7)
}
 0x217   : > { %s3197_s22 = scalar_lea.hbm %s4351_s8, 64  ;;  %s3201_s24 = scalar_lea.hbm %s4398_s3, 128 }
 0x218   : > { %p3198_p9 = scmp.ne.s32.totalorder %s4351_s8, %s3197_s22  ;;  %p3202_p0 = scmp.lt.u32.totalorder %s4351_s8, %s4398_s3 }
 0x219   : > { %p3203_p11 = scmp.lt.u32.totalorder %s3201_s24, %s3197_s22  ;;  %p3205_p4 = scmp.lt.u32.totalorder %s3197_s22, %s4351_s8 }
 0x21a   : > { %p3199_p2 = pnand %p3198_p9, %p3377_p12 }
 0x21b   : > { %p3204_p1 = por %p3203_p11, %p3202_p0 }
 0x21c   : > { %p3200_p5 = pneg %p3199_p2 }
 0x21d   : > { %p3206_p6 = por %p3205_p4, %p3204_p1 }
 0x21f   : > { %p3207_p8 = pnand %p3206_p6, %p3200_p5 }
 0x221   : > { %3210 = shalt.err (!%p3207_p8)
}
 0x222   : > { %3041 = dma.vmem_to_hbm [thread:$0]  (%p3377_p12), %s4353_s27, 64, %s4351_s8, %s2234_s9  }
 0x223 PF: > { %s2260_s6 = sand.u32 1, %s3241_s14   ;;  %p4413_p10 = scmp.ne.s32.totalorder %s4403_s20, 0 }
 0x224   : > { %p4414_p13 = scmp.ge.s32.totalorder %s3253_s17, 2  ;;  %s2261_s19 = scalar_lea.sflag [#allocation6], %s2260_s6 }
 0x226   : > { %p3052_p3 = pnand %p4414_p13, %p4413_p10 }
 0x228   : > { %3236 = dma.done.wait (!%p3052_p3), %s2261_s19, 64  }
 0x229   : > { %3238 = vsyncadd (!%p3052_p3), %s2261_s19, 4294967232  ;;  %p18_p7 = scmp.ge.s32.totalorder %s3342_s25, 4   ;;  %s4415_s14 = smov %s3245_s15 }
 0x22a   : > { %s4416_s15 = smov %s3249_s16  ;;  %s4417_s16 = smov %s3373_s13 }
 0x22b   : > { %s4418_s17 = smov %s3342_s25  ;;  %20 = sbr.rel (!%p18_p7) target bundleno = 8 (0x8), region = 84 }
 0x232   :  { %2266 = vsyncpa [#allocation5], 1 }
 0x233   :  { %2268 = vsyncpa [#allocation5 + $0x1], 1 }
 0x234   :  { %2269 = vsyncpa [#allocation8], 1 }
 0x235   :  { %2270 = vsyncpa [#allocation6], 1 }
 0x236   :  { %2272 = vsyncpa [#allocation6 + $0x1], 1 }

</bundles_post_ra>
